<compile_context>
chip_gen: v7x
topology: tpu7x:2x2x1
jax: 0.10.0
libtpu: 0.0.40
codegen_flags: <defaults>
</compile_context>

<pallas_src>
import jax
import jax.numpy as jnp
from jax.experimental import pallas as pl
from jax.experimental.pallas import tpu as pltpu


def _round_up(x, m):
    return ((x + m - 1) // m) * m


def _pick_batch_tile(B):
    """Adaptive batch tile: full (8-aligned) batch when small, 256/512 when big."""
    B8 = _round_up(B, 8)
    if B8 <= 256:
        return B8            # single grid step, minimal padding
    if B8 <= 2048:
        return 256           # >=2 grid steps (v7x megacore), amortized step overhead
    return 512


def discrete_action_predictor_forward(states, next_states, params, *,
                                      batch_tile=None):
    """Fused 4-layer MLP: (Linear+ReLU) x3 + Linear.  Returns [B, A] f32.

    params = (w1, b1, w2, b2, w3, b3, w4, b4), weights [in, out], biases [1, out].
    """
    w1, b1, w2, b2, w3, b3, w4, b4 = params
    B, E = states.shape
    H = w1.shape[1]                      # hidden width (512)
    A = w4.shape[1]                      # num_actions

    if batch_tile is None:
        batch_tile = _pick_batch_tile(B)
    assert batch_tile % 8 == 0, "batch_tile must be a multiple of 8 (sublanes)"

    # --- lane-pad the output head to a multiple of 128 (dense vst) ----------
    A_pad = max(128, _round_up(A, 128))
    if A_pad != A:
        w4 = jnp.pad(w4, ((0, 0), (0, A_pad - A)))
        b4 = jnp.pad(b4, ((0, 0), (0, A_pad - A)))

    # --- single fused producer: concat -> bf16 -> batch pad ------------------
    bf16 = jnp.bfloat16
    B_pad = _round_up(B, batch_tile)
    x = jnp.concatenate([states, next_states], axis=1).astype(bf16)   # [B, 2E]
    if B_pad != B:
        x = jnp.pad(x, ((0, B_pad - B), (0, 0)))

    w1b, w2b, w3b, w4b = (w.astype(bf16) for w in (w1, w2, w3, w4))
    b1f, b2f, b3f, b4f = (b.astype(jnp.float32) for b in (b1, b2, b3, b4))

    def mlp_kernel(x_ref, w1_ref, b1_ref, w2_ref, b2_ref,
                   w3_ref, b3_ref, w4_ref, b4_ref, o_ref):
        # Layer 1: single K=2E dot (lane-dense input, full MXU depth).
        h = jnp.dot(x_ref[...], w1_ref[...],
                    preferred_element_type=jnp.float32) + b1_ref[...]
        h = jnp.maximum(h, 0.0).astype(bf16)
        # Layer 2
        h = jnp.dot(h, w2_ref[...],
                    preferred_element_type=jnp.float32) + b2_ref[...]
        h = jnp.maximum(h, 0.0).astype(bf16)
        # Layer 3
        h = jnp.dot(h, w3_ref[...],
                    preferred_element_type=jnp.float32) + b3_ref[...]
        h = jnp.maximum(h, 0.0).astype(bf16)
        # Output head (lane-padded to A_pad)
        logits = jnp.dot(h, w4_ref[...],
                         preferred_element_type=jnp.float32) + b4_ref[...]
        o_ref[...] = logits.astype(o_ref.dtype)

    def resident(arr):
        # Grid-invariant block: fetched once; single-buffer it (halves its
        # VMEM footprint vs. the default double buffering).
        return pl.BlockSpec(arr.shape, lambda i: (0, 0),
                            pipeline_mode=pl.Buffered(buffer_count=1))

    in_specs = [
        pl.BlockSpec((batch_tile, 2 * E), lambda i: (i, 0)),   # x tile (bf16)
        resident(w1b), resident(b1f),
        resident(w2b), resident(b2f),
        resident(w3b), resident(b3f),
        resident(w4b), resident(b4f),
    ]
    out_spec = pl.BlockSpec((batch_tile, A_pad), lambda i: (i, 0))

    flops = 2 * B_pad * (2 * E * H + 2 * H * H + H * A_pad)
    bytes_accessed = (
        B_pad * 2 * E * 2                                   # x (bf16)
        + (2 * E * H + 2 * H * H + H * A_pad) * 2           # weights (bf16)
        + (3 * H + A_pad) * 4                               # biases (f32)
        + B_pad * A_pad * 4                                 # output (f32)
    )

    out = pl.pallas_call(
        mlp_kernel,
        grid=(B_pad // batch_tile,),
        in_specs=in_specs,
        out_specs=out_spec,
        out_shape=jax.ShapeDtypeStruct((B_pad, A_pad), jnp.float32),
        compiler_params=pltpu.CompilerParams(
            dimension_semantics=("parallel",)),
        cost_estimate=pl.CostEstimate(flops=flops, transcendentals=0,
                                      bytes_accessed=bytes_accessed),
    )(x, w1b, b1f, w2b, b2f, w3b, b3f, w4b, b4f)

    return out[:B, :A]


def init_params(key, embedding_size, num_actions):
    """Deterministic init mimicking nn.Linear's default U(-1/sqrt(fan_in), +)."""
    dims = [2 * embedding_size, 512, 512, 512, num_actions]
    params = []
    for din, dout in zip(dims[:-1], dims[1:]):
        key, kw, kb = jax.random.split(key, 3)
        bound = 1.0 / float(jnp.sqrt(float(din)))
        w = jax.random.uniform(kw, (din, dout), jnp.float32, -bound, bound)
        b = jax.random.uniform(kb, (1, dout), jnp.float32, -bound, bound)
        params += [w, b]
    return params


def reference_forward_bf16(states, next_states, params):
    """Same math as the kernel (bf16 matmul operands, f32 accumulation)."""
    w1, b1, w2, b2, w3, b3, w4, b4 = params
    bf = jnp.bfloat16
    x = jnp.concatenate([states, next_states], axis=1).astype(bf)
    h = jnp.maximum(jnp.dot(x, w1.astype(bf),
                            preferred_element_type=jnp.float32) + b1, 0.0)
    h = jnp.maximum(jnp.dot(h.astype(bf), w2.astype(bf),
                            preferred_element_type=jnp.float32) + b2, 0.0)
    h = jnp.maximum(jnp.dot(h.astype(bf), w3.astype(bf),
                            preferred_element_type=jnp.float32) + b3, 0.0)
    return jnp.dot(h.astype(bf), w4.astype(bf),
                   preferred_element_type=jnp.float32) + b4


if __name__ == "__main__":
    embedding_size = 64
    num_actions = 16

    key = jax.random.PRNGKey(0)
    key, ks, kn, kp = jax.random.split(key, 4)
    params = init_params(kp, embedding_size, num_actions)

    # --- small batch: single grid step, batch_tile == round_up(B, 8) --------
    batch_size = 8
    states = jax.random.normal(ks, (batch_size, embedding_size), jnp.float32)
    next_states = jax.random.normal(kn, (batch_size, embedding_size), jnp.float32)

    logits = discrete_action_predictor_forward(states, next_states, params)
    logits = jax.block_until_ready(logits)
    ref = reference_forward_bf16(states, next_states, params)
    assert logits.shape == (batch_size, num_actions)
    assert jnp.allclose(logits, ref, atol=1e-2, rtol=1e-2)

    # --- ragged batch: exercises batch padding + multi-step grid ------------
    key, ks2, kn2 = jax.random.split(key, 3)
    B2 = 200
    s2 = jax.random.normal(ks2, (B2, embedding_size), jnp.float32)
    n2 = jax.random.normal(kn2, (B2, embedding_size), jnp.float32)
    logits2 = discrete_action_predictor_forward(s2, n2, params, batch_tile=128)
    logits2 = jax.block_until_ready(logits2)
    ref2 = reference_forward_bf16(s2, n2, params)
    assert logits2.shape == (B2, num_actions)
    assert jnp.allclose(logits2, ref2, atol=1e-2, rtol=1e-2)

    print("KERNEL_OK")
</pallas_src>

<mosaic_0001>
module attributes {stable_mosaic.version = 11 : i64} {
  func.func @mlp_kernel(%arg0: i32, %arg1: memref<8x128xbf16, #tpu.memory_space<vmem>>, %arg2: memref<128x512xbf16, #tpu.memory_space<vmem>>, %arg3: memref<1x512xf32, #tpu.memory_space<vmem>>, %arg4: memref<512x512xbf16, #tpu.memory_space<vmem>>, %arg5: memref<1x512xf32, #tpu.memory_space<vmem>>, %arg6: memref<512x512xbf16, #tpu.memory_space<vmem>>, %arg7: memref<1x512xf32, #tpu.memory_space<vmem>>, %arg8: memref<512x128xbf16, #tpu.memory_space<vmem>>, %arg9: memref<1x128xf32, #tpu.memory_space<vmem>>, %arg10: memref<8x128xf32, #tpu.memory_space<vmem>>) attributes {dimension_semantics = [#tpu.dimension_semantics<parallel>], iteration_bounds = array<i64: 1>, scalar_prefetch = 0 : i64, scratch_operands = 0 : i64, tpu.core_type = #tpu.core_type<tc>, window_params = [{transform_indices = @transform_0, window_bounds = array<i64: 8, 128>}, {pipeline_mode = #tpu.pipeline_mode<synchronous>, transform_indices = @transform_1, window_bounds = array<i64: 128, 512>}, {pipeline_mode = #tpu.pipeline_mode<synchronous>, transform_indices = @transform_2, window_bounds = array<i64: 1, 512>}, {pipeline_mode = #tpu.pipeline_mode<synchronous>, transform_indices = @transform_3, window_bounds = array<i64: 512, 512>}, {pipeline_mode = #tpu.pipeline_mode<synchronous>, transform_indices = @transform_4, window_bounds = array<i64: 1, 512>}, {pipeline_mode = #tpu.pipeline_mode<synchronous>, transform_indices = @transform_5, window_bounds = array<i64: 512, 512>}, {pipeline_mode = #tpu.pipeline_mode<synchronous>, transform_indices = @transform_6, window_bounds = array<i64: 1, 512>}, {pipeline_mode = #tpu.pipeline_mode<synchronous>, transform_indices = @transform_7, window_bounds = array<i64: 512, 128>}, {pipeline_mode = #tpu.pipeline_mode<synchronous>, transform_indices = @transform_8, window_bounds = array<i64: 1, 128>}, {transform_indices = @transform_9, window_bounds = array<i64: 8, 128>}]} {
    %c0 = arith.constant 0 : index
    %c0_0 = arith.constant 0 : index
    %0 = vector.load %arg1[%c0, %c0_0] : memref<8x128xbf16, #tpu.memory_space<vmem>>, vector<8x128xbf16>
    %c0_1 = arith.constant 0 : index
    %c0_2 = arith.constant 0 : index
    %1 = vector.load %arg2[%c0_1, %c0_2] : memref<128x512xbf16, #tpu.memory_space<vmem>>, vector<128x512xbf16>
    %cst = arith.constant dense<0.000000e+00> : vector<8x512xf32>
    %2 = tpu.matmul %0, %1, %cst {dimension_numbers = #tpu.dot_dimension_numbers<[1], [0], [0], [1], [0, 0, 1, 1], [], []>} : vector<8x128xbf16>, vector<128x512xbf16>, vector<8x512xf32> -> vector<8x512xf32>
    %c0_3 = arith.constant 0 : index
    %c0_4 = arith.constant 0 : index
    %3 = vector.load %arg3[%c0_3, %c0_4] : memref<1x512xf32, #tpu.memory_space<vmem>>, vector<1x512xf32>
    %4 = vector.broadcast %3 : vector<1x512xf32> to vector<8x512xf32>
    %5 = arith.addf %2, %4 : vector<8x512xf32>
    %cst_5 = arith.constant 0.000000e+00 : f32
    %6 = vector.broadcast %cst_5 : f32 to vector<8x512xf32>
    %7 = arith.maximumf %5, %6 : vector<8x512xf32>
    %8 = arith.truncf %7 : vector<8x512xf32> to vector<8x512xbf16>
    %c0_6 = arith.constant 0 : index
    %c0_7 = arith.constant 0 : index
    %9 = vector.load %arg4[%c0_6, %c0_7] : memref<512x512xbf16, #tpu.memory_space<vmem>>, vector<512x512xbf16>
    %cst_8 = arith.constant dense<0.000000e+00> : vector<8x512xf32>
    %10 = tpu.matmul %8, %9, %cst_8 {dimension_numbers = #tpu.dot_dimension_numbers<[1], [0], [0], [1], [0, 0, 1, 1], [], []>} : vector<8x512xbf16>, vector<512x512xbf16>, vector<8x512xf32> -> vector<8x512xf32>
    %c0_9 = arith.constant 0 : index
    %c0_10 = arith.constant 0 : index
    %11 = vector.load %arg5[%c0_9, %c0_10] : memref<1x512xf32, #tpu.memory_space<vmem>>, vector<1x512xf32>
    %12 = vector.broadcast %11 : vector<1x512xf32> to vector<8x512xf32>
    %13 = arith.addf %10, %12 : vector<8x512xf32>
    %cst_11 = arith.constant 0.000000e+00 : f32
    %14 = vector.broadcast %cst_11 : f32 to vector<8x512xf32>
    %15 = arith.maximumf %13, %14 : vector<8x512xf32>
    %16 = arith.truncf %15 : vector<8x512xf32> to vector<8x512xbf16>
    %c0_12 = arith.constant 0 : index
    %c0_13 = arith.constant 0 : index
    %17 = vector.load %arg6[%c0_12, %c0_13] : memref<512x512xbf16, #tpu.memory_space<vmem>>, vector<512x512xbf16>
    %cst_14 = arith.constant dense<0.000000e+00> : vector<8x512xf32>
    %18 = tpu.matmul %16, %17, %cst_14 {dimension_numbers = #tpu.dot_dimension_numbers<[1], [0], [0], [1], [0, 0, 1, 1], [], []>} : vector<8x512xbf16>, vector<512x512xbf16>, vector<8x512xf32> -> vector<8x512xf32>
    %c0_15 = arith.constant 0 : index
    %c0_16 = arith.constant 0 : index
    %19 = vector.load %arg7[%c0_15, %c0_16] : memref<1x512xf32, #tpu.memory_space<vmem>>, vector<1x512xf32>
    %20 = vector.broadcast %19 : vector<1x512xf32> to vector<8x512xf32>
    %21 = arith.addf %18, %20 : vector<8x512xf32>
    %cst_17 = arith.constant 0.000000e+00 : f32
    %22 = vector.broadcast %cst_17 : f32 to vector<8x512xf32>
    %23 = arith.maximumf %21, %22 : vector<8x512xf32>
    %24 = arith.truncf %23 : vector<8x512xf32> to vector<8x512xbf16>
    %c0_18 = arith.constant 0 : index
    %c0_19 = arith.constant 0 : index
    %25 = vector.load %arg8[%c0_18, %c0_19] : memref<512x128xbf16, #tpu.memory_space<vmem>>, vector<512x128xbf16>
    %cst_20 = arith.constant dense<0.000000e+00> : vector<8x128xf32>
    %26 = tpu.matmul %24, %25, %cst_20 {dimension_numbers = #tpu.dot_dimension_numbers<[1], [0], [0], [1], [0, 0, 1, 1], [], []>} : vector<8x512xbf16>, vector<512x128xbf16>, vector<8x128xf32> -> vector<8x128xf32>
    %c0_21 = arith.constant 0 : index
    %c0_22 = arith.constant 0 : index
    %27 = vector.load %arg9[%c0_21, %c0_22] : memref<1x128xf32, #tpu.memory_space<vmem>>, vector<1x128xf32>
    %28 = vector.broadcast %27 : vector<1x128xf32> to vector<8x128xf32>
    %29 = arith.addf %26, %28 : vector<8x128xf32>
    %c0_23 = arith.constant 0 : index
    %c0_24 = arith.constant 0 : index
    %30 = vector.load %arg10[%c0_23, %c0_24] : memref<8x128xf32, #tpu.memory_space<vmem>>, vector<8x128xf32>
    tpu.vector_store %arg10[%c0_23, %c0_24], %29 {strides = array<i32>} : memref<8x128xf32, #tpu.memory_space<vmem>>, vector<8x128xf32>,
    return
  }
  func.func @transform_0(%arg0: i32) -> (i32, i32) {
    %c0_i32 = arith.constant 0 : i32
    %c0_i32_0 = arith.constant 0 : i32
    return %arg0, %c0_i32 : i32, i32
  }
  func.func @transform_1(%arg0: i32) -> (i32, i32) {
    %c0_i32 = arith.constant 0 : i32
    %c0_i32_0 = arith.constant 0 : i32
    %c0_i32_1 = arith.constant 0 : i32
    return %c0_i32, %c0_i32_0 : i32, i32
  }
  func.func @transform_2(%arg0: i32) -> (i32, i32) {
    %c0_i32 = arith.constant 0 : i32
    %c0_i32_0 = arith.constant 0 : i32
    %c0_i32_1 = arith.constant 0 : i32
    return %c0_i32, %c0_i32_0 : i32, i32
  }
  func.func @transform_3(%arg0: i32) -> (i32, i32) {
    %c0_i32 = arith.constant 0 : i32
    %c0_i32_0 = arith.constant 0 : i32
    %c0_i32_1 = arith.constant 0 : i32
    return %c0_i32, %c0_i32_0 : i32, i32
  }
  func.func @transform_4(%arg0: i32) -> (i32, i32) {
    %c0_i32 = arith.constant 0 : i32
    %c0_i32_0 = arith.constant 0 : i32
    %c0_i32_1 = arith.constant 0 : i32
    return %c0_i32, %c0_i32_0 : i32, i32
  }
  func.func @transform_5(%arg0: i32) -> (i32, i32) {
    %c0_i32 = arith.constant 0 : i32
    %c0_i32_0 = arith.constant 0 : i32
    %c0_i32_1 = arith.constant 0 : i32
    return %c0_i32, %c0_i32_0 : i32, i32
  }
  func.func @transform_6(%arg0: i32) -> (i32, i32) {
    %c0_i32 = arith.constant 0 : i32
    %c0_i32_0 = arith.constant 0 : i32
    %c0_i32_1 = arith.constant 0 : i32
    return %c0_i32, %c0_i32_0 : i32, i32
  }
  func.func @transform_7(%arg0: i32) -> (i32, i32) {
    %c0_i32 = arith.constant 0 : i32
    %c0_i32_0 = arith.constant 0 : i32
    %c0_i32_1 = arith.constant 0 : i32
    return %c0_i32, %c0_i32_0 : i32, i32
  }
  func.func @transform_8(%arg0: i32) -> (i32, i32) {
    %c0_i32 = arith.constant 0 : i32
    %c0_i32_0 = arith.constant 0 : i32
    %c0_i32_1 = arith.constant 0 : i32
    return %c0_i32, %c0_i32_0 : i32, i32
  }
  func.func @transform_9(%arg0: i32) -> (i32, i32) {
    %c0_i32 = arith.constant 0 : i32
    %c0_i32_0 = arith.constant 0 : i32
    return %arg0, %c0_i32 : i32, i32
  }
}

</mosaic_0001>

<bundles_post_ra>
// kernel: tpu_custom_call.1
= control target key start
LH: loop header
LB: loop body
LE: loop exit
PB: predicated region body
PF: predicated region fallthrough
CT: control target
= control target key end

     0   :  { %14 = vsyncpa [#allocation3], 0  ;;  %s3892_s0 = inlined_call_operand.hbm [shape: bf16[8,128], index: 0, kind: input, shape index: {}]   ;;  %s3893_s1 = inlined_call_operand.hbm [shape: bf16[128,512], index: 1, kind: input, shape index: {}]   ;;  %s3894_s2 = inlined_call_operand.vmem [shape: f32[1,512], index: 2, kind: input, shape index: {}]   ;;  %s3895_s3 = inlined_call_operand.hbm [shape: bf16[512,512], index: 3, kind: input, shape index: {}]   ;;  %s3896_s4 = inlined_call_operand.vmem [shape: f32[1,512], index: 4, kind: input, shape index: {}]   ;;  %s3897_s5 = inlined_call_operand.hbm [shape: bf16[512,512], index: 5, kind: input, shape index: {}]   ;;  %s3898_s6 = inlined_call_operand.vmem [shape: f32[1,512], index: 6, kind: input, shape index: {}]   ;;  %s3899_s7 = inlined_call_operand.hbm [shape: bf16[512,128], index: 7, kind: input, shape index: {}]   ;;  %s3900_s8 = inlined_call_operand.vmem [shape: f32[1,128], index: 8, kind: input, shape index: {}]   ;;  %s3901_s9 = inlined_call_operand.hbm [shape: f32[8,128], index: 9, kind: output, shape index: {}]  }
   0x1   :  { %15 = vsyncpa [#allocation6], 0 }
   0x2   :  { %16 = vsyncpa [#allocation9], 0 }
   0x3   :  { %17 = vsyncpa [#allocation4], 0  ;;  %s3694_s30 = smov [#allocation5]   ;;  %s3554_s13 = scalar_lea.hbm %s3893_s1, 4096 }
   0x4   :  { %s33_s10 = sshll.u32 %s3694_s30, 4  ;;  %p3555_p0 = scmp.ne.s32.totalorder %s3893_s1, %s3554_s13  ;;  %s34_s10 = int_to_ptr.vmem [resolvable:$true] %s33_s10 }
   0x5   :  { %p3558_p1 = scmp.lt.u32.totalorder %s3554_s13, %s3893_s1 }
   0x7   :  { %p3560_p2 = pnand %p3558_p1, %p3555_p0 }
   0x9   :  { %3563 = shalt.err (!%p3560_p2)
}
   0xa   :  { %s3564_s18 = scalar_lea.vmem %s34_s10, 4096  ;;  %p3569_p4 = scmp.lt.s32.totalorder %s34_s10, %s34_s10 }
   0xb   :  { %p3565_p3 = scmp.ne.s32.totalorder %s34_s10, %s3564_s18  ;;  %p3570_p5 = scmp.lt.s32.totalorder %s3564_s18, %s3564_s18 }
   0xd   :  { %p3571_p6 = por %p3570_p5, %p3569_p4 }
   0xf   :  { %p3572_p7 = pnand %p3571_p6, %p3565_p3 }
  0x11   :  { %3575 = shalt.err (!%p3572_p7)
}
  0x12   :  { %s3695_s19 = smov 256   ;;  %s3696_s20 = smov 16  }
  0x13   :  { %39 = dma.hbm_to_vmem [thread:$0]  %s3893_s1, 4096, %s34_s10, [#allocation6], %s3695_s19, %s3695_s19, %s3696_s20  }
  0x14   :  { %s3697_s23 = smov [#allocation8]   ;;  %s3698_s25 = smov [#allocation2]  }
  0x15   :  { %s61_s24 = sshll.u32 %s3697_s23, 4  ;;  %s24_s26 = sshll.u32 %s3698_s25, 4  ;;  %s62_s24 = int_to_ptr.vmem [resolvable:$true] %s61_s24  ;;  %s25_s26 = int_to_ptr.vmem [resolvable:$true] %s24_s26 }
  0x16   :  { %s3576_s29 = scalar_lea.hbm %s3897_s5, 16384 }
  0x17   :  { %p3577_p8 = scmp.ne.s32.totalorder %s3897_s5, %s3576_s29  ;;  %p3580_p9 = scmp.lt.u32.totalorder %s3576_s29, %s3897_s5 }
  0x19   :  { %p3582_p10 = pnand %p3580_p9, %p3577_p8 }
  0x1b   :  { %3585 = shalt.err (!%p3582_p10)
}
  0x1c   :  { %s3586_s1 = scalar_lea.vmem %s62_s24, 16384  ;;  %p3591_p12 = scmp.lt.s32.totalorder %s62_s24, %s62_s24 }
  0x1d   :  { %p3587_p11 = scmp.ne.s32.totalorder %s62_s24, %s3586_s1  ;;  %p3592_p13 = scmp.lt.s32.totalorder %s3586_s1, %s3586_s1 }
  0x1f   :  { %p3593_p0 = por %p3592_p13, %p3591_p12 }
  0x21   :  { %p3594_p1 = pnand %p3593_p0, %p3587_p11 }
  0x23   :  { %3597 = shalt.err (!%p3594_p1)
}
  0x24   :  { %67 = dma.hbm_to_vmem [thread:$0]  %s3897_s5, 16384, %s62_s24, [#allocation9], %s3695_s19, %s3695_s19, %s3696_s20  }
  0x25   :  { %s3598_s17 = scalar_lea.hbm %s3892_s0, 64 }
  0x26   :  { %p3599_p2 = scmp.ne.s32.totalorder %s3892_s0, %s3598_s17  ;;  %p3602_p3 = scmp.lt.u32.totalorder %s3598_s17, %s3892_s0 }
  0x28   :  { %p3604_p4 = pnand %p3602_p3, %p3599_p2 }
  0x2a   :  { %3607 = shalt.err (!%p3604_p4)
}
  0x2b   :  { %s3608_s25 = scalar_lea.vmem %s25_s26, 64  ;;  %p3613_p6 = scmp.lt.s32.totalorder %s25_s26, %s25_s26 }
  0x2c   :  { %p3609_p5 = scmp.ne.s32.totalorder %s25_s26, %s3608_s25  ;;  %p3614_p7 = scmp.lt.s32.totalorder %s3608_s25, %s3608_s25 }
  0x2e   :  { %p3615_p8 = por %p3614_p7, %p3613_p6 }
  0x30   :  { %p3616_p9 = pnand %p3615_p8, %p3609_p5 }
  0x32   :  { %3619 = shalt.err (!%p3616_p9)
}
  0x33   :  { %27 = dma.hbm_to_vmem [thread:$0]  %s3892_s0, 64, %s25_s26, [#allocation3]  }
  0x34   :  { %s3699_s27 = smov [#allocation7]   ;;  %s3700_s29 = smov [#allocation10]  }
  0x35   :  { %s47_s28 = sshll.u32 %s3699_s27, 4  ;;  %s75_s30 = sshll.u32 %s3700_s29, 4  ;;  %s48_s28 = int_to_ptr.vmem [resolvable:$true] %s47_s28  ;;  %s76_s30 = int_to_ptr.vmem [resolvable:$true] %s75_s30 }
  0x36   :  { %s3620_s13 = scalar_lea.hbm %s3895_s3, 16384 }
  0x37   :  { %p3621_p10 = scmp.ne.s32.totalorder %s3895_s3, %s3620_s13  ;;  %p3624_p11 = scmp.lt.u32.totalorder %s3620_s13, %s3895_s3 }
  0x39   :  { %p3626_p12 = pnand %p3624_p11, %p3621_p10 }
  0x3b   :  { %3629 = shalt.err (!%p3626_p12)
}
  0x3c   :  { %s3630_s0 = scalar_lea.vmem %s48_s28, 16384  ;;  %p3635_p0 = scmp.lt.s32.totalorder %s48_s28, %s48_s28 }
  0x3d   :  { %p3631_p13 = scmp.ne.s32.totalorder %s48_s28, %s3630_s0  ;;  %p3636_p1 = scmp.lt.s32.totalorder %s3630_s0, %s3630_s0 }
  0x3f   :  { %p3637_p2 = por %p3636_p1, %p3635_p0 }
  0x41   :  { %p3638_p3 = pnand %p3637_p2, %p3631_p13 }
  0x43   :  { %3641 = shalt.err (!%p3638_p3)
}
  0x44   :  { %53 = dma.hbm_to_vmem [thread:$0]  %s3895_s3, 16384, %s48_s28, [#allocation6], %s3695_s19, %s3695_s19, %s3696_s20  }
  0x45   :  { %s3642_s21 = scalar_lea.hbm %s3899_s7, 4096 }
  0x46   :  { %p3643_p4 = scmp.ne.s32.totalorder %s3899_s7, %s3642_s21  ;;  %p3646_p5 = scmp.lt.u32.totalorder %s3642_s21, %s3899_s7 }
  0x48   :  { %p3648_p6 = pnand %p3646_p5, %p3643_p4 }
  0x4a   :  { %3651 = shalt.err (!%p3648_p6)
}
  0x4b   :  { %s3652_s24 = scalar_lea.vmem %s76_s30, 4096  ;;  %p3657_p8 = scmp.lt.s32.totalorder %s76_s30, %s76_s30 }
  0x4c   :  { %p3653_p7 = scmp.ne.s32.totalorder %s76_s30, %s3652_s24  ;;  %p3658_p9 = scmp.lt.s32.totalorder %s3652_s24, %s3652_s24 }
  0x4e   :  { %p3659_p10 = por %p3658_p9, %p3657_p8 }
  0x50   :  { %p3660_p11 = pnand %p3659_p10, %p3653_p7 }
  0x52   :  { %3663 = shalt.err (!%p3660_p11)
}
  0x53   :  { %s3701_s3 = smov 64   ;;  %s3702_s19 = smov 4  }
  0x54   :  { %81 = dma.hbm_to_vmem [thread:$0]  %s3899_s7, 4096, %s76_s30, [#allocation9], %s3701_s3, %s3701_s3, %s3702_s19  }
  0x55   :  { %3686 = dma.done.wait [#allocation3], 64  }
  0x56   :  { %3687 = vsyncadd [#allocation3], 4294967232 }
  0x57   :  { %3688 = dma.done.wait [#allocation6], 20480  }
  0x58   :  { %3689 = vsyncadd [#allocation6], 4294946816 }
  0x59   :  { %3690 = dma.done.wait [#allocation9], 20480  }
  0x5a   :  { %3691 = vsyncadd [#allocation9], 4294946816  ;;  %v3703_v0 = vmov 0   ;;  %v3090_v1 = vld [vmem:[#allocation5 + $0x4] ss:$16 sps:$4 sm:$0xff]   ;;  %s3704_s12 = smov [#allocation11]  }
  0x5b   :  { %347 = vmatprep.mubr.bf16.mxu0 %v3703_v0  ;;  %388 = vmatprep.mubr.bf16.mxu1 %v3703_v0  ;;  %v3092_v2 = vld [vmem:[#allocation5] ss:$16 sps:$4 sm:$0xff]   ;;  %v3093_v3 = vld [vmem:[#allocation5 + $0x24] ss:$16 sps:$4 sm:$0xff]   ;;  %v3114_v10 = vld [vmem:[#allocation5 + $0xc] ss:$16 sps:$4 sm:$0xff]  }
  0x5c   :  { %315 = vmatprep.subr.bf16.mxu0 %v3090_v1  ;;  %v3095_v4 = vld [vmem:[#allocation5 + $0x20] ss:$16 sps:$4 sm:$0xff]   ;;  %v3096_v5 = vld [vmem:[#allocation5 + $0x44] ss:$16 sps:$4 sm:$0xff]   ;;  %v3116_v11 = vld [vmem:[#allocation5 + $0x8] ss:$16 sps:$4 sm:$0xff]   ;;  %356 = vmatprep.subr.bf16.mxu1 %v3114_v10 }
  0x5d   :  { %316 = vmatpush1.bf16.msra.mxu0 %v3092_v2  ;;  %v3098_v6 = vld [vmem:[#allocation5 + $0x40] ss:$16 sps:$4 sm:$0xff]   ;;  %v3099_v7 = vld [vmem:[#allocation5 + $0x64] ss:$16 sps:$4 sm:$0xff]   ;;  %v3117_v12 = vld [vmem:[#allocation5 + $0x2c] ss:$16 sps:$4 sm:$0xff]   ;;  %357 = vmatpush1.bf16.msra.mxu1 %v3116_v11 }
  0x5e   :  { %317 = vmatprep.subr.bf16.mxu0 %v3093_v3  ;;  %v3101_v8 = vld [vmem:[#allocation5 + $0x60] ss:$16 sps:$4 sm:$0xff]   ;;  %v3102_v9 = vld [vmem:[#allocation5 + $0x84] ss:$16 sps:$4 sm:$0xff]   ;;  %v3119_v14 = vld [vmem:[#allocation5 + $0x28] ss:$16 sps:$4 sm:$0xff]   ;;  %358 = vmatprep.subr.bf16.mxu1 %v3117_v12 }
  0x5f   :  { %v3104_v13 = vld [vmem:[#allocation5 + $0x80] ss:$16 sps:$4 sm:$0xff]   ;;  %v3120_v15 = vld [vmem:[#allocation5 + $0x4c] ss:$16 sps:$4 sm:$0xff]   ;;  %v3105_v16 = vld [vmem:[#allocation5 + $0xa4] ss:$16 sps:$4 sm:$0xff]  }
  0x60   :  { %v3107_v17 = vld [vmem:[#allocation5 + $0xa0] ss:$16 sps:$4 sm:$0xff]   ;;  %v3122_v18 = vld [vmem:[#allocation5 + $0x48] ss:$16 sps:$4 sm:$0xff]   ;;  %v3123_v19 = vld [vmem:[#allocation5 + $0x6c] ss:$16 sps:$4 sm:$0xff]  }
  0x61   :  { %318 = vmatpush1.bf16.msra.mxu0 %v3095_v4  ;;  %359 = vmatpush1.bf16.msra.mxu1 %v3119_v14  ;;  %v3108_v20 = vld [vmem:[#allocation5 + $0xc4] ss:$16 sps:$4 sm:$0xff]   ;;  %v3110_v21 = vld [vmem:[#allocation5 + $0xc0] ss:$16 sps:$4 sm:$0xff]   ;;  %v3125_v22 = vld [vmem:[#allocation5 + $0x68] ss:$16 sps:$4 sm:$0xff]  }
  0x62   :  { %319 = vmatprep.subr.bf16.mxu0 %v3096_v5  ;;  %360 = vmatprep.subr.bf16.mxu1 %v3120_v15  ;;  %v3126_v23 = vld [vmem:[#allocation5 + $0x8c] ss:$16 sps:$4 sm:$0xff]   ;;  %v3111_v24 = vld [vmem:[#allocation5 + $0xe4] ss:$16 sps:$4 sm:$0xff]   ;;  %v3113_v25 = vld [vmem:[#allocation5 + $0xe0] ss:$16 sps:$4 sm:$0xff]  }
  0x63   :  { %v3128_v26 = vld [vmem:[#allocation5 + $0x88] ss:$16 sps:$4 sm:$0xff]   ;;  %v3129_v27 = vld [vmem:[#allocation5 + $0xac] ss:$16 sps:$4 sm:$0xff]   ;;  %v3140_v28 = vld [vmem:[#allocation7 + $0x4] ss:$16 sps:$4 sm:$0xff]  }
  0x64   :  { %v100_v29 = vld [vmem:[#allocation2] sm:$0xf]  ;;  %v3131_v30 = vld [vmem:[#allocation5 + $0xa8] ss:$16 sps:$4 sm:$0xff]   ;;  %v3138_v32 = vld [vmem:[#allocation7] ss:$16 sps:$4 sm:$0xff]  }
  0x65   :  { %320 = vmatpush1.bf16.msra.mxu0 %v3098_v6  ;;  %361 = vmatpush1.bf16.msra.mxu1 %v3122_v18  ;;  %v3132_v31 = vld [vmem:[#allocation5 + $0xcc] ss:$16 sps:$4 sm:$0xff]   ;;  %v3146_v33 = vld [vmem:[#allocation7 + $0x24] ss:$16 sps:$4 sm:$0xff]   ;;  %v3134_v34 = vld [vmem:[#allocation5 + $0xc8] ss:$16 sps:$4 sm:$0xff]  }
  0x66   :  { %321 = vmatprep.subr.bf16.mxu0 %v3099_v7  ;;  %362 = vmatprep.subr.bf16.mxu1 %v3123_v19  ;;  %v3135_v35 = vld [vmem:[#allocation5 + $0xec] ss:$16 sps:$4 sm:$0xff]   ;;  %v3144_v36 = vld [vmem:[#allocation7 + $0x20] ss:$16 sps:$4 sm:$0xff]   ;;  %v3152_v37 = vld [vmem:[#allocation7 + $0x44] ss:$16 sps:$4 sm:$0xff]  }
  0x67   :  { %v3137_v38 = vld [vmem:[#allocation5 + $0xe8] ss:$16 sps:$4 sm:$0xff]   ;;  %v3143_v39 = vld [vmem:[#allocation7 + $0xc] ss:$16 sps:$4 sm:$0xff]   ;;  %v3150_v40 = vld [vmem:[#allocation7 + $0x40] ss:$16 sps:$4 sm:$0xff]  }
  0x68   :  { %v3158_v41 = vld [vmem:[#allocation7 + $0x64] ss:$16 sps:$4 sm:$0xff]   ;;  %v3141_v42 = vld [vmem:[#allocation7 + $0x8] ss:$16 sps:$4 sm:$0xff]   ;;  %v3149_v43 = vld [vmem:[#allocation7 + $0x2c] ss:$16 sps:$4 sm:$0xff]  }
  0x69   :  { %322 = vmatpush1.bf16.msra.mxu0 %v3101_v8  ;;  %363 = vmatpush1.bf16.msra.mxu1 %v3125_v22  ;;  %v3156_v44 = vld [vmem:[#allocation7 + $0x60] ss:$16 sps:$4 sm:$0xff]   ;;  %v3164_v45 = vld [vmem:[#allocation7 + $0x84] ss:$16 sps:$4 sm:$0xff]   ;;  %v3147_v46 = vld [vmem:[#allocation7 + $0x28] ss:$16 sps:$4 sm:$0xff]  }
  0x6a   :  { %323 = vmatprep.subr.bf16.mxu0 %v3102_v9  ;;  %364 = vmatprep.subr.bf16.mxu1 %v3126_v23  ;;  %v3155_v47 = vld [vmem:[#allocation7 + $0x4c] ss:$16 sps:$4 sm:$0xff]   ;;  %v3162_v48 = vld [vmem:[#allocation7 + $0x80] ss:$16 sps:$4 sm:$0xff]   ;;  %v3170_v49 = vld [vmem:[#allocation7 + $0xa4] ss:$16 sps:$4 sm:$0xff]  }
  0x6b   :  { %v3153_v50 = vld [vmem:[#allocation7 + $0x48] ss:$16 sps:$4 sm:$0xff]   ;;  %v3161_v51 = vld [vmem:[#allocation7 + $0x6c] ss:$16 sps:$4 sm:$0xff]   ;;  %v3168_v52 = vld [vmem:[#allocation7 + $0xa0] ss:$16 sps:$4 sm:$0xff]  }
  0x6c   :  { %v3176_v53 = vld [vmem:[#allocation7 + $0xc4] ss:$16 sps:$4 sm:$0xff]   ;;  %v3159_v54 = vld [vmem:[#allocation7 + $0x68] ss:$16 sps:$4 sm:$0xff]   ;;  %v3167_v55 = vld [vmem:[#allocation7 + $0x8c] ss:$16 sps:$4 sm:$0xff]  }
  0x6d   :  { %324 = vmatpush1.bf16.msra.mxu0 %v3104_v13  ;;  %365 = vmatpush1.bf16.msra.mxu1 %v3128_v26  ;;  %v3174_v56 = vld [vmem:[#allocation7 + $0xc0] ss:$16 sps:$4 sm:$0xff]   ;;  %v3182_v57 = vld [vmem:[#allocation7 + $0xe4] ss:$16 sps:$4 sm:$0xff]   ;;  %v3165_v58 = vld [vmem:[#allocation7 + $0x88] ss:$16 sps:$4 sm:$0xff]  }
  0x6e   :  { %325 = vmatprep.subr.bf16.mxu0 %v3105_v16  ;;  %366 = vmatprep.subr.bf16.mxu1 %v3129_v27  ;;  %v3173_v59 = vld [vmem:[#allocation7 + $0xac] ss:$16 sps:$4 sm:$0xff]   ;;  %v3180_v60 = vld [vmem:[#allocation7 + $0xe0] ss:$16 sps:$4 sm:$0xff]   ;;  %v3188_v61 = vld [vmem:[#allocation7 + $0x104] ss:$16 sps:$4 sm:$0xff]  }
  0x6f   :  { %v3171_v62 = vld [vmem:[#allocation7 + $0xa8] ss:$16 sps:$4 sm:$0xff]   ;;  %v3179_v63 = vld [vmem:[#allocation7 + $0xcc] ss:$16 sps:$4 sm:$0xff]   ;;  %v3186_v0 = vld [vmem:[#allocation7 + $0x100] ss:$16 sps:$4 sm:$0xff]  }
  0x70   :  { %v3194_v1 = vld [vmem:[#allocation7 + $0x124] ss:$16 sps:$4 sm:$0xff]   ;;  %v3177_v2 = vld [vmem:[#allocation7 + $0xc8] ss:$16 sps:$4 sm:$0xff]   ;;  %v3185_v3 = vld [vmem:[#allocation7 + $0xec] ss:$16 sps:$4 sm:$0xff]  }
  0x71   :  { %326 = vmatpush1.bf16.msra.mxu0 %v3107_v17  ;;  %367 = vmatpush1.bf16.msra.mxu1 %v3131_v30  ;;  %v3192_v4 = vld [vmem:[#allocation7 + $0x120] ss:$16 sps:$4 sm:$0xff]   ;;  %v3200_v5 = vld [vmem:[#allocation7 + $0x144] ss:$16 sps:$4 sm:$0xff]   ;;  %v3183_v6 = vld [vmem:[#allocation7 + $0xe8] ss:$16 sps:$4 sm:$0xff]  }
  0x72   :  { %327 = vmatprep.subr.bf16.mxu0 %v3108_v20  ;;  %368 = vmatprep.subr.bf16.mxu1 %v3132_v31  ;;  %v3191_v7 = vld [vmem:[#allocation7 + $0x10c] ss:$16 sps:$4 sm:$0xff]   ;;  %v3198_v8 = vld [vmem:[#allocation7 + $0x140] ss:$16 sps:$4 sm:$0xff]   ;;  %v3206_v9 = vld [vmem:[#allocation7 + $0x164] ss:$16 sps:$4 sm:$0xff]  }
  0x73   :  { %v3189_v10 = vld [vmem:[#allocation7 + $0x108] ss:$16 sps:$4 sm:$0xff]   ;;  %v3197_v11 = vld [vmem:[#allocation7 + $0x12c] ss:$16 sps:$4 sm:$0xff]   ;;  %v3204_v12 = vld [vmem:[#allocation7 + $0x160] ss:$16 sps:$4 sm:$0xff]  }
  0x74   :  { %v3212_v13 = vld [vmem:[#allocation7 + $0x184] ss:$16 sps:$4 sm:$0xff]   ;;  %v3195_v14 = vld [vmem:[#allocation7 + $0x128] ss:$16 sps:$4 sm:$0xff]   ;;  %v3203_v15 = vld [vmem:[#allocation7 + $0x14c] ss:$16 sps:$4 sm:$0xff]  }
  0x75   :  { %328 = vmatpush1.bf16.msra.mxu0 %v3110_v21  ;;  %369 = vmatpush1.bf16.msra.mxu1 %v3134_v34  ;;  %v3210_v16 = vld [vmem:[#allocation7 + $0x180] ss:$16 sps:$4 sm:$0xff]   ;;  %v3218_v17 = vld [vmem:[#allocation7 + $0x1a4] ss:$16 sps:$4 sm:$0xff]   ;;  %v3201_v18 = vld [vmem:[#allocation7 + $0x148] ss:$16 sps:$4 sm:$0xff]  }
  0x76   :  { %329 = vmatprep.subr.bf16.mxu0 %v3111_v24  ;;  %370 = vmatprep.subr.bf16.mxu1 %v3135_v35  ;;  %v3209_v19 = vld [vmem:[#allocation7 + $0x16c] ss:$16 sps:$4 sm:$0xff]   ;;  %v3216_v20 = vld [vmem:[#allocation7 + $0x1a0] ss:$16 sps:$4 sm:$0xff]   ;;  %v3207_v21 = vld [vmem:[#allocation7 + $0x168] ss:$16 sps:$4 sm:$0xff]  }
  0x77   :  { %v3215_v22 = vld [vmem:[#allocation7 + $0x18c] ss:$16 sps:$4 sm:$0xff]   ;;  %v3213_v23 = vld [vmem:[#allocation7 + $0x188] ss:$16 sps:$4 sm:$0xff]   ;;  %v3224_v26 = vld [vmem:[#allocation7 + $0x1c4] ss:$16 sps:$4 sm:$0xff]  }
  0x78   :  { %v3221_v24 = vld [vmem:[#allocation7 + $0x1ac] ss:$16 sps:$4 sm:$0xff]   ;;  %v3230_v30 = vld [vmem:[#allocation7 + $0x1e4] ss:$16 sps:$4 sm:$0xff]   ;;  %s2679_s13 = sshll.u32 %s3704_s12, 4  ;;  %s2680_s13 = int_to_ptr.vmem [resolvable:$true] %s2679_s13 }
  0x79   :  { %330 = vmatpush1.bf16.msra.mxu0 %v3113_v25  ;;  %371 = vmatpush1.bf16.msra.mxu1 %v3137_v38  ;;  %v3219_v25 = vld [vmem:[#allocation7 + $0x1a8] ss:$16 sps:$4 sm:$0xff]   ;;  %v3227_v27 = vld [vmem:[#allocation7 + $0x1cc] ss:$16 sps:$4 sm:$0xff]   ;;  %v3236_v34 = vld [vmem:[#allocation7 + $0x204] ss:$16 sps:$4 sm:$0xff]   ;;  %p3669_p13 = scmp.lt.s32.totalorder %s2680_s13, %s2680_s13 }
  0x7a   :  { %1195 = vmatprep.subr.bf16.mxu0 %v3140_v28  ;;  %1277 = vmatprep.subr.bf16.mxu1 %v3143_v39  ;;  %v3222_v28 = vld [vmem:[#allocation7 + $0x1c0] ss:$16 sps:$4 sm:$0xff]   ;;  %v3233_v31 = vld [vmem:[#allocation7 + $0x1ec] ss:$16 sps:$4 sm:$0xff]   ;;  %s3664_s1 = scalar_lea.vmem %s2680_s13, 128 }
  0x7b   :  { %v3239_v35 = vld [vmem:[#allocation7 + $0x20c] ss:$16 sps:$4 sm:$0xff]   ;;  %p3665_p12 = scmp.ne.s32.totalorder %s2680_s13, %s3664_s1  ;;  %p3670_p0 = scmp.lt.s32.totalorder %s3664_s1, %s3664_s1 }
  0x7c   :  { %348 = vmatmul.mubr.bf16.vlgmr.msra.gmra.mrb[0].mxu0 %v100_v29  ;;  %389 = vmatmul.mubr.bf16.vlgmr.msra.gmra.mrb[0].mxu1 %v100_v29  ;;  %v3225_v29 = vld [vmem:[#allocation7 + $0x1c8] ss:$16 sps:$4 sm:$0xff]   ;;  %v3832_v39 = vld [vmem:[%s3894_s2] sm:$0xf] }
  0x7d   :  { %1196 = vmatpush1.bf16.msra.mxu0 %v3138_v32  ;;  %1278 = vmatpush1.bf16.msra.mxu1 %v3141_v42  ;;  %v3228_v32 = vld [vmem:[#allocation7 + $0x1e0] ss:$16 sps:$4 sm:$0xff]   ;;  %p3671_p1 = por %p3670_p0, %p3669_p13 }
  0x7e   :  { %1197 = vmatprep.subr.bf16.mxu0 %v3146_v33  ;;  %1279 = vmatprep.subr.bf16.mxu1 %v3149_v43  ;;  %v3231_v33 = vld [vmem:[#allocation7 + $0x1e8] ss:$16 sps:$4 sm:$0xff]  }
  0x7f   :  { %p3672_p2 = pnand %p3671_p1, %p3665_p12 }
  0x81   :  { %1198 = vmatpush1.bf16.msra.mxu0 %v3144_v36  ;;  %1280 = vmatpush1.bf16.msra.mxu1 %v3147_v46  ;;  %v135_v36 = vlaneseq }
  0x82   :  { %1199 = vmatprep.subr.bf16.mxu0 %v3152_v37  ;;  %1281 = vmatprep.subr.bf16.mxu1 %v3155_v47 }
  0x83   :  { %v3824_v37 = vshrl.u32 %v135_v36, 7  ;;  %v3296_v36 = vld [vmem:[#allocation7 + $0x344] ss:$16 sps:$4 sm:$0xff]  }
  0x85   :  { %1200 = vmatpush1.bf16.msra.mxu0 %v3150_v40  ;;  %1282 = vmatpush1.bf16.msra.mxu1 %v3153_v50  ;;  %v3827_v38 = vsub.s32 0, %v3824_v37  ;;  %v3835_v40 = vsub.s32 1, %v3824_v37 }
  0x86   :  { %1201 = vmatprep.subr.bf16.mxu0 %v3158_v41  ;;  %1283 = vmatprep.subr.bf16.mxu1 %v3161_v51  ;;  %v3842_v51 = vsub.s32 3, %v3824_v37 }
  0x87   :  { %v138_v41 = vrot.slane %v3832_v39, %v3827_v38  ;;  %v142_v42 = vrot.slane %v3832_v39, %v3835_v40 }
  0x89   :  { %1202 = vmatpush1.bf16.msra.mxu0 %v3156_v44  ;;  %1284 = vmatpush1.bf16.msra.mxu1 %v3159_v54  ;;  %v3237_v54 = vld [vmem:[#allocation7 + $0x208] ss:$16 sps:$4 sm:$0xff]  }
  0x8a   :  { %1203 = vmatprep.subr.bf16.mxu0 %v3164_v45  ;;  %1285 = vmatprep.subr.bf16.mxu1 %v3167_v55 }
  0x8d   :  { %1204 = vmatpush1.bf16.msra.mxu0 %v3162_v48  ;;  %1286 = vmatpush1.bf16.msra.mxu1 %v3165_v58  ;;  %v150_v58 = vrot.slane %v3832_v39, %v3842_v51 }
  0x8e   :  { %1205 = vmatprep.subr.bf16.mxu0 %v3170_v49  ;;  %1287 = vmatprep.subr.bf16.mxu1 %v3173_v59  ;;  %v3240_v59 = vld [vmem:[#allocation7 + $0x220] ss:$16 sps:$4 sm:$0xff]  }
  0x91   :  { %1206 = vmatpush1.bf16.msra.mxu0 %v3168_v52  ;;  %1288 = vmatpush1.bf16.msra.mxu1 %v3171_v62  ;;  %v3251_v62 = vld [vmem:[#allocation7 + $0x24c] ss:$16 sps:$4 sm:$0xff]  }
  0x92   :  { %1207 = vmatprep.subr.bf16.mxu0 %v3176_v53  ;;  %1289 = vmatprep.subr.bf16.mxu1 %v3179_v63  ;;  %v3234_v53 = vld [vmem:[#allocation7 + $0x200] ss:$16 sps:$4 sm:$0xff]  }
  0x95   :  { %1208 = vmatpush1.bf16.msra.mxu0 %v3174_v56  ;;  %1290 = vmatpush1.bf16.msra.mxu1 %v3177_v2  ;;  %v3242_v56 = vld [vmem:[#allocation7 + $0x224] ss:$16 sps:$4 sm:$0xff]  }
  0x96   :  { %1209 = vmatprep.subr.bf16.mxu0 %v3182_v57  ;;  %1291 = vmatprep.subr.bf16.mxu1 %v3185_v3  ;;  %v3245_v57 = vld [vmem:[#allocation7 + $0x22c] ss:$16 sps:$4 sm:$0xff]   ;;  %v3246_v3 = vld [vmem:[#allocation7 + $0x240] ss:$16 sps:$4 sm:$0xff]  }
  0x99   :  { %1210 = vmatpush1.bf16.msra.mxu0 %v3180_v60  ;;  %1292 = vmatpush1.bf16.msra.mxu1 %v3183_v6  ;;  %v3243_v60 = vld [vmem:[#allocation7 + $0x228] ss:$16 sps:$4 sm:$0xff]   ;;  %v3254_v6 = vld [vmem:[#allocation7 + $0x264] ss:$16 sps:$4 sm:$0xff]  }
  0x9a   :  { %1211 = vmatprep.subr.bf16.mxu0 %v3188_v61  ;;  %1293 = vmatprep.subr.bf16.mxu1 %v3191_v7  ;;  %v3248_v61 = vld [vmem:[#allocation7 + $0x244] ss:$16 sps:$4 sm:$0xff]   ;;  %v3257_v7 = vld [vmem:[#allocation7 + $0x26c] ss:$16 sps:$4 sm:$0xff]  }
  0x9d   :  { %1212 = vmatpush1.bf16.msra.mxu0 %v3186_v0  ;;  %1294 = vmatpush1.bf16.msra.mxu1 %v3189_v10  ;;  %v3252_v10 = vld [vmem:[#allocation7 + $0x260] ss:$16 sps:$4 sm:$0xff]  }
  0x9e   :  { %1213 = vmatprep.subr.bf16.mxu0 %v3194_v1  ;;  %1295 = vmatprep.subr.bf16.mxu1 %v3197_v11  ;;  %v3255_v11 = vld [vmem:[#allocation7 + $0x268] ss:$16 sps:$4 sm:$0xff]  }
  0xa1   :  { %1214 = vmatpush1.bf16.msra.mxu0 %v3192_v4  ;;  %1296 = vmatpush1.bf16.msra.mxu1 %v3195_v14  ;;  %v3249_v4 = vld [vmem:[#allocation7 + $0x248] ss:$16 sps:$4 sm:$0xff]   ;;  %v3258_v14 = vld [vmem:[#allocation7 + $0x280] ss:$16 sps:$4 sm:$0xff]  }
  0xa2   :  { %1215 = vmatprep.subr.bf16.mxu0 %v3200_v5  ;;  %1297 = vmatprep.subr.bf16.mxu1 %v3203_v15  ;;  %v3261_v15 = vld [vmem:[#allocation7 + $0x288] ss:$16 sps:$4 sm:$0xff]  }
  0xa5   :  { %1216 = vmatpush1.bf16.msra.mxu0 %v3198_v8  ;;  %1298 = vmatpush1.bf16.msra.mxu1 %v3201_v18  ;;  %v3264_v18 = vld [vmem:[#allocation7 + $0x2a0] ss:$16 sps:$4 sm:$0xff]  }
  0xa6   :  { %1217 = vmatprep.subr.bf16.mxu0 %v3206_v9  ;;  %1299 = vmatprep.subr.bf16.mxu1 %v3209_v19  ;;  %v3267_v19 = vld [vmem:[#allocation7 + $0x2a8] ss:$16 sps:$4 sm:$0xff]  }
  0xa9   :  { %1218 = vmatpush1.bf16.msra.mxu0 %v3204_v12  ;;  %1300 = vmatpush1.bf16.msra.mxu1 %v3207_v21  ;;  %v3260_v12 = vld [vmem:[#allocation7 + $0x284] ss:$16 sps:$4 sm:$0xff]   ;;  %v3275_v21 = vld [vmem:[#allocation7 + $0x2cc] ss:$16 sps:$4 sm:$0xff]  }
  0xaa   :  { %1219 = vmatprep.subr.bf16.mxu0 %v3212_v13  ;;  %1301 = vmatprep.subr.bf16.mxu1 %v3215_v22  ;;  %v3263_v13 = vld [vmem:[#allocation7 + $0x28c] ss:$16 sps:$4 sm:$0xff]   ;;  %v3270_v22 = vld [vmem:[#allocation7 + $0x2c0] ss:$16 sps:$4 sm:$0xff]  }
  0xad   :  { %1220 = vmatpush1.bf16.msra.mxu0 %v3210_v16  ;;  %1302 = vmatpush1.bf16.msra.mxu1 %v3213_v23  ;;  %v3266_v16 = vld [vmem:[#allocation7 + $0x2a4] ss:$16 sps:$4 sm:$0xff]   ;;  %v3273_v23 = vld [vmem:[#allocation7 + $0x2c8] ss:$16 sps:$4 sm:$0xff]  }
  0xae   :  { %1221 = vmatprep.subr.bf16.mxu0 %v3218_v17  ;;  %1303 = vmatprep.subr.bf16.mxu1 %v3221_v24  ;;  %v3269_v17 = vld [vmem:[#allocation7 + $0x2ac] ss:$16 sps:$4 sm:$0xff]   ;;  %v3278_v24 = vld [vmem:[#allocation7 + $0x2e4] ss:$16 sps:$4 sm:$0xff]  }
  0xb1   :  { %1222 = vmatpush1.bf16.msra.mxu0 %v3216_v20  ;;  %1304 = vmatpush1.bf16.msra.mxu1 %v3219_v25  ;;  %v3272_v20 = vld [vmem:[#allocation7 + $0x2c4] ss:$16 sps:$4 sm:$0xff]   ;;  %v3281_v25 = vld [vmem:[#allocation7 + $0x2ec] ss:$16 sps:$4 sm:$0xff]  }
  0xb2   :  { %1223 = vmatprep.subr.bf16.mxu0 %v3224_v26  ;;  %1305 = vmatprep.subr.bf16.mxu1 %v3227_v27  ;;  %v3276_v26 = vld [vmem:[#allocation7 + $0x2e0] ss:$16 sps:$4 sm:$0xff]   ;;  %v3279_v27 = vld [vmem:[#allocation7 + $0x2e8] ss:$16 sps:$4 sm:$0xff]  }
  0xb5   :  { %1224 = vmatpush1.bf16.msra.mxu0 %v3222_v28  ;;  %1306 = vmatpush1.bf16.msra.mxu1 %v3225_v29  ;;  %v3284_v28 = vld [vmem:[#allocation7 + $0x304] ss:$16 sps:$4 sm:$0xff]   ;;  %v3287_v29 = vld [vmem:[#allocation7 + $0x30c] ss:$16 sps:$4 sm:$0xff]  }
  0xb6   :  { %1225 = vmatprep.subr.bf16.mxu0 %v3230_v30  ;;  %1307 = vmatprep.subr.bf16.mxu1 %v3233_v31  ;;  %v3282_v30 = vld [vmem:[#allocation7 + $0x300] ss:$16 sps:$4 sm:$0xff]   ;;  %v3285_v31 = vld [vmem:[#allocation7 + $0x308] ss:$16 sps:$4 sm:$0xff]  }
  0xb9   :  { %1226 = vmatpush1.bf16.msra.mxu0 %v3228_v32  ;;  %1308 = vmatpush1.bf16.msra.mxu1 %v3231_v33  ;;  %v3290_v32 = vld [vmem:[#allocation7 + $0x324] ss:$16 sps:$4 sm:$0xff]   ;;  %v3293_v33 = vld [vmem:[#allocation7 + $0x32c] ss:$16 sps:$4 sm:$0xff]  }
  0xba   :  { %1236 = vmatprep.subr.bf16.mxu0 %v3236_v34  ;;  %1318 = vmatprep.subr.bf16.mxu1 %v3239_v35  ;;  %v3288_v34 = vld [vmem:[#allocation7 + $0x320] ss:$16 sps:$4 sm:$0xff]   ;;  %v3291_v35 = vld [vmem:[#allocation7 + $0x328] ss:$16 sps:$4 sm:$0xff]  }
 0x14f   :  { %v349_v43 = vpop.f32.mrb[0].mxu0  ;;  %v3846_v63 = vpop.f32.mrb[0].mxu1 }
 0x150   :  { %v350_v44 = vadd.f32 %v349_v43, %v138_v41  ;;  %v351_v45 = vpop.f32.mrb[1].mxu0  ;;  %v392_v0 = vpop.f32.mrb[1].mxu1  ;;  %v3299_v41 = vld [vmem:[#allocation7 + $0x34c] ss:$16 sps:$4 sm:$0xff]   ;;  %v3297_v43 = vld [vmem:[#allocation7 + $0x348] ss:$16 sps:$4 sm:$0xff]  }
 0x151   :  { %v352_v46 = vadd.f32 %v351_v45, %v142_v42  ;;  %v353_v47 = vpop.f32.mrb[2].mxu0  ;;  %v393_v1 = vadd.f32 %v392_v0, %v150_v58  ;;  %v394_v2 = vpop.f32.mrb[2].mxu1  ;;  %v3294_v42 = vld [vmem:[#allocation7 + $0x340] ss:$16 sps:$4 sm:$0xff]   ;;  %v3305_v45 = vld [vmem:[#allocation7 + $0x36c] ss:$16 sps:$4 sm:$0xff]  }
 0x152   :  { %v397_v48 = vmax.f32 %v350_v44, 0.0  ;;  %v354_v49 = vpop.f32.mrb[3].mxu0  ;;  %v395_v5 = vpop.f32.mrb[3].mxu1  ;;  %v3302_v44 = vld [vmem:[#allocation7 + $0x364] ss:$16 sps:$4 sm:$0xff]  }
 0x153   :  { %v398_v50 = vmax.f32 %v352_v46, 0.0  ;;  %v400_v8 = vmax.f32 %v393_v1, 0.0  ;;  %v3300_v46 = vld [vmem:[#allocation7 + $0x360] ss:$16 sps:$4 sm:$0xff]   ;;  %v3303_v47 = vld [vmem:[#allocation7 + $0x368] ss:$16 sps:$4 sm:$0xff]  }
 0x154   :  { %v401_v55 = vpack.c.bf16 %v397_v48, %v397_v48  ;;  %v3308_v48 = vld [vmem:[#allocation7 + $0x384] ss:$16 sps:$4 sm:$0xff]   ;;  %v3311_v49 = vld [vmem:[#allocation7 + $0x38c] ss:$16 sps:$4 sm:$0xff]   ;;  %v3324_v2 = vld [vmem:[#allocation7 + $0x3e0] ss:$16 sps:$4 sm:$0xff]  }
 0x155   :  { %v402_v52 = vpack.c.bf16 %v398_v50, %v398_v50  ;;  %v404_v9 = vpack.c.bf16 %v400_v8, %v400_v8  ;;  %v3306_v50 = vld [vmem:[#allocation7 + $0x380] ss:$16 sps:$4 sm:$0xff]   ;;  %v3326_v0 = vld [vmem:[#allocation7 + $0x3e4] ss:$16 sps:$4 sm:$0xff]   ;;  %v3329_v1 = vld [vmem:[#allocation7 + $0x3ec] ss:$16 sps:$4 sm:$0xff]  }
 0x156   :  { %v3335_v5 = vld [vmem:[#allocation8 + $0xc] ss:$16 sps:$4 sm:$0xff]  }
 0x157   :  { %1227 = vmatprep.mubr.bf16.mxu0 %v402_v52  ;;  %1309 = vmatprep.mubr.bf16.mxu1 %v402_v52  ;;  %v3309_v52 = vld [vmem:[#allocation7 + $0x388] ss:$16 sps:$4 sm:$0xff]  }
 0x158   :  { %1228 = vmatmul.mubr.bf16.vlgmr.msra.gmra.mrb[4].mxu0 %v401_v55  ;;  %1310 = vmatmul.mubr.bf16.vlgmr.msra.gmra.mrb[4].mxu1 %v401_v55  ;;  %v3317_v55 = vld [vmem:[#allocation7 + $0x3ac] ss:$16 sps:$4 sm:$0xff]  }
 0x159   :  { %1237 = vmatpush1.bf16.msra.mxu0 %v3234_v53  ;;  %1319 = vmatpush1.bf16.msra.mxu1 %v3237_v54  ;;  %v3849_v53 = vsub.s32 2, %v3824_v37  ;;  %v3314_v54 = vld [vmem:[#allocation7 + $0x3a4] ss:$16 sps:$4 sm:$0xff]  }
 0x15a   :  { %1238 = vmatprep.subr.bf16.mxu0 %v3242_v56  ;;  %1320 = vmatprep.subr.bf16.mxu1 %v3245_v57  ;;  %v3312_v56 = vld [vmem:[#allocation7 + $0x3a0] ss:$16 sps:$4 sm:$0xff]   ;;  %v3315_v57 = vld [vmem:[#allocation7 + $0x3a8] ss:$16 sps:$4 sm:$0xff]  }
 0x15b   :  { %1268 = vmatprep.mubr.bf16.mxu0 %v404_v9  ;;  %1350 = vmatprep.mubr.bf16.mxu1 %v404_v9  ;;  %v146_v58 = vrot.slane %v3832_v39, %v3849_v53  ;;  %v3332_v39 = vld [vmem:[#allocation8 + $0x4] ss:$16 sps:$4 sm:$0xff]   ;;  %v3341_v9 = vld [vmem:[#allocation8 + $0x2c] ss:$16 sps:$4 sm:$0xff]  }
 0x15d   :  { %1239 = vmatpush1.bf16.msra.mxu0 %v3240_v59  ;;  %1321 = vmatpush1.bf16.msra.mxu1 %v3243_v60  ;;  %v3320_v59 = vld [vmem:[#allocation7 + $0x3c4] ss:$16 sps:$4 sm:$0xff]   ;;  %v3323_v60 = vld [vmem:[#allocation7 + $0x3cc] ss:$16 sps:$4 sm:$0xff]   ;;  %v391_v37 = vadd.f32 %v3846_v63, %v146_v58 }
 0x15e   :  { %1240 = vmatprep.subr.bf16.mxu0 %v3248_v61  ;;  %1322 = vmatprep.subr.bf16.mxu1 %v3251_v62  ;;  %v3318_v61 = vld [vmem:[#allocation7 + $0x3c0] ss:$16 sps:$4 sm:$0xff]   ;;  %v3321_v62 = vld [vmem:[#allocation7 + $0x3c8] ss:$16 sps:$4 sm:$0xff]   ;;  %v3338_v63 = vld [vmem:[#allocation8 + $0x24] ss:$16 sps:$4 sm:$0xff]  }
 0x15f   :  { %v3404_v58 = vld [vmem:[#allocation8 + $0x184] ss:$16 sps:$4 sm:$0xff]  }
 0x161   :  { %1241 = vmatpush1.bf16.msra.mxu0 %v3246_v3  ;;  %1323 = vmatpush1.bf16.msra.mxu1 %v3249_v4  ;;  %v3327_v3 = vld [vmem:[#allocation7 + $0x3e8] ss:$16 sps:$4 sm:$0xff]   ;;  %v399_v4 = vmax.f32 %v391_v37, 0.0  ;;  %v3413_v37 = vld [vmem:[#allocation8 + $0x1ac] ss:$16 sps:$4 sm:$0xff]  }
 0x162   :  { %1242 = vmatprep.subr.bf16.mxu0 %v3254_v6  ;;  %1324 = vmatprep.subr.bf16.mxu1 %v3257_v7  ;;  %v3330_v6 = vld [vmem:[#allocation8] ss:$16 sps:$4 sm:$0xff]   ;;  %v3333_v7 = vld [vmem:[#allocation8 + $0x8] ss:$16 sps:$4 sm:$0xff]  }
 0x163   :  { %v403_v8 = vpack.c.bf16 %v399_v4, %v399_v4  ;;  %v3414_v4 = vld [vmem:[#allocation8 + $0x1c0] ss:$16 sps:$4 sm:$0xff]  }
 0x165   :  { %1243 = vmatpush1.bf16.msra.mxu0 %v3252_v10  ;;  %1325 = vmatpush1.bf16.msra.mxu1 %v3255_v11  ;;  %v3336_v10 = vld [vmem:[#allocation8 + $0x20] ss:$16 sps:$4 sm:$0xff]   ;;  %v3339_v11 = vld [vmem:[#allocation8 + $0x28] ss:$16 sps:$4 sm:$0xff]  }
 0x166   :  { %1244 = vmatprep.subr.bf16.mxu0 %v3260_v12  ;;  %1326 = vmatprep.subr.bf16.mxu1 %v3263_v13  ;;  %v3344_v12 = vld [vmem:[#allocation8 + $0x44] ss:$16 sps:$4 sm:$0xff]   ;;  %v3347_v13 = vld [vmem:[#allocation8 + $0x4c] ss:$16 sps:$4 sm:$0xff]  }
 0x169   :  { %1245 = vmatpush1.bf16.msra.mxu0 %v3258_v14  ;;  %1327 = vmatpush1.bf16.msra.mxu1 %v3261_v15  ;;  %v3342_v14 = vld [vmem:[#allocation8 + $0x40] ss:$16 sps:$4 sm:$0xff]   ;;  %v3345_v15 = vld [vmem:[#allocation8 + $0x48] ss:$16 sps:$4 sm:$0xff]  }
 0x16a   :  { %1246 = vmatprep.subr.bf16.mxu0 %v3266_v16  ;;  %1328 = vmatprep.subr.bf16.mxu1 %v3269_v17  ;;  %v3350_v16 = vld [vmem:[#allocation8 + $0x64] ss:$16 sps:$4 sm:$0xff]   ;;  %v3353_v17 = vld [vmem:[#allocation8 + $0x6c] ss:$16 sps:$4 sm:$0xff]  }
 0x16d   :  { %1247 = vmatpush1.bf16.msra.mxu0 %v3264_v18  ;;  %1329 = vmatpush1.bf16.msra.mxu1 %v3267_v19  ;;  %v3348_v18 = vld [vmem:[#allocation8 + $0x60] ss:$16 sps:$4 sm:$0xff]   ;;  %v3351_v19 = vld [vmem:[#allocation8 + $0x68] ss:$16 sps:$4 sm:$0xff]  }
 0x16e   :  { %1248 = vmatprep.subr.bf16.mxu0 %v3272_v20  ;;  %1330 = vmatprep.subr.bf16.mxu1 %v3275_v21  ;;  %v3356_v20 = vld [vmem:[#allocation8 + $0x84] ss:$16 sps:$4 sm:$0xff]   ;;  %v3359_v21 = vld [vmem:[#allocation8 + $0x8c] ss:$16 sps:$4 sm:$0xff]  }
 0x171   :  { %1249 = vmatpush1.bf16.msra.mxu0 %v3270_v22  ;;  %1331 = vmatpush1.bf16.msra.mxu1 %v3273_v23  ;;  %v3354_v22 = vld [vmem:[#allocation8 + $0x80] ss:$16 sps:$4 sm:$0xff]   ;;  %v3357_v23 = vld [vmem:[#allocation8 + $0x88] ss:$16 sps:$4 sm:$0xff]  }
 0x172   :  { %1250 = vmatprep.subr.bf16.mxu0 %v3278_v24  ;;  %1332 = vmatprep.subr.bf16.mxu1 %v3281_v25  ;;  %v3362_v24 = vld [vmem:[#allocation8 + $0xa4] ss:$16 sps:$4 sm:$0xff]   ;;  %v3365_v25 = vld [vmem:[#allocation8 + $0xac] ss:$16 sps:$4 sm:$0xff]  }
 0x175   :  { %1251 = vmatpush1.bf16.msra.mxu0 %v3276_v26  ;;  %1333 = vmatpush1.bf16.msra.mxu1 %v3279_v27  ;;  %v3360_v26 = vld [vmem:[#allocation8 + $0xa0] ss:$16 sps:$4 sm:$0xff]   ;;  %v3363_v27 = vld [vmem:[#allocation8 + $0xa8] ss:$16 sps:$4 sm:$0xff]  }
 0x176   :  { %1252 = vmatprep.subr.bf16.mxu0 %v3284_v28  ;;  %1334 = vmatprep.subr.bf16.mxu1 %v3287_v29  ;;  %v3368_v28 = vld [vmem:[#allocation8 + $0xc4] ss:$16 sps:$4 sm:$0xff]   ;;  %v3371_v29 = vld [vmem:[#allocation8 + $0xcc] ss:$16 sps:$4 sm:$0xff]  }
 0x179   :  { %1253 = vmatpush1.bf16.msra.mxu0 %v3282_v30  ;;  %1335 = vmatpush1.bf16.msra.mxu1 %v3285_v31  ;;  %v3366_v30 = vld [vmem:[#allocation8 + $0xc0] ss:$16 sps:$4 sm:$0xff]   ;;  %v3369_v31 = vld [vmem:[#allocation8 + $0xc8] ss:$16 sps:$4 sm:$0xff]  }
 0x17a   :  { %1254 = vmatprep.subr.bf16.mxu0 %v3290_v32  ;;  %1336 = vmatprep.subr.bf16.mxu1 %v3293_v33  ;;  %v3374_v32 = vld [vmem:[#allocation8 + $0xe4] ss:$16 sps:$4 sm:$0xff]   ;;  %v3377_v33 = vld [vmem:[#allocation8 + $0xec] ss:$16 sps:$4 sm:$0xff]  }
 0x17d   :  { %1255 = vmatpush1.bf16.msra.mxu0 %v3288_v34  ;;  %1337 = vmatpush1.bf16.msra.mxu1 %v3291_v35  ;;  %v3372_v34 = vld [vmem:[#allocation8 + $0xe0] ss:$16 sps:$4 sm:$0xff]   ;;  %v3375_v35 = vld [vmem:[#allocation8 + $0xe8] ss:$16 sps:$4 sm:$0xff]  }
 0x17e   :  { %1256 = vmatprep.subr.bf16.mxu0 %v3296_v36  ;;  %1338 = vmatprep.subr.bf16.mxu1 %v3299_v41  ;;  %v3380_v36 = vld [vmem:[#allocation8 + $0x104] ss:$16 sps:$4 sm:$0xff]   ;;  %v3383_v41 = vld [vmem:[#allocation8 + $0x10c] ss:$16 sps:$4 sm:$0xff]  }
 0x181   :  { %1257 = vmatpush1.bf16.msra.mxu0 %v3294_v42  ;;  %1339 = vmatpush1.bf16.msra.mxu1 %v3297_v43  ;;  %v3378_v42 = vld [vmem:[#allocation8 + $0x100] ss:$16 sps:$4 sm:$0xff]   ;;  %v3381_v43 = vld [vmem:[#allocation8 + $0x108] ss:$16 sps:$4 sm:$0xff]  }
 0x182   :  { %1258 = vmatprep.subr.bf16.mxu0 %v3302_v44  ;;  %1340 = vmatprep.subr.bf16.mxu1 %v3305_v45  ;;  %v3386_v44 = vld [vmem:[#allocation8 + $0x124] ss:$16 sps:$4 sm:$0xff]   ;;  %v3389_v45 = vld [vmem:[#allocation8 + $0x12c] ss:$16 sps:$4 sm:$0xff]  }
 0x185   :  { %1259 = vmatpush1.bf16.msra.mxu0 %v3300_v46  ;;  %1341 = vmatpush1.bf16.msra.mxu1 %v3303_v47  ;;  %v3384_v46 = vld [vmem:[#allocation8 + $0x120] ss:$16 sps:$4 sm:$0xff]   ;;  %v3387_v47 = vld [vmem:[#allocation8 + $0x128] ss:$16 sps:$4 sm:$0xff]  }
 0x186   :  { %1260 = vmatprep.subr.bf16.mxu0 %v3308_v48  ;;  %1342 = vmatprep.subr.bf16.mxu1 %v3311_v49  ;;  %v3392_v48 = vld [vmem:[#allocation8 + $0x144] ss:$16 sps:$4 sm:$0xff]   ;;  %v3395_v49 = vld [vmem:[#allocation8 + $0x14c] ss:$16 sps:$4 sm:$0xff]  }
 0x189   :  { %1261 = vmatpush1.bf16.msra.mxu0 %v3306_v50  ;;  %1343 = vmatpush1.bf16.msra.mxu1 %v3309_v52  ;;  %v3390_v50 = vld [vmem:[#allocation8 + $0x140] ss:$16 sps:$4 sm:$0xff]   ;;  %v3393_v52 = vld [vmem:[#allocation8 + $0x148] ss:$16 sps:$4 sm:$0xff]  }
 0x18a   :  { %1262 = vmatprep.subr.bf16.mxu0 %v3314_v54  ;;  %1344 = vmatprep.subr.bf16.mxu1 %v3317_v55  ;;  %v3398_v54 = vld [vmem:[#allocation8 + $0x164] ss:$16 sps:$4 sm:$0xff]   ;;  %v3401_v55 = vld [vmem:[#allocation8 + $0x16c] ss:$16 sps:$4 sm:$0xff]  }
 0x18d   :  { %1263 = vmatpush1.bf16.msra.mxu0 %v3312_v56  ;;  %1345 = vmatpush1.bf16.msra.mxu1 %v3315_v57  ;;  %v3396_v56 = vld [vmem:[#allocation8 + $0x160] ss:$16 sps:$4 sm:$0xff]   ;;  %v3399_v57 = vld [vmem:[#allocation8 + $0x168] ss:$16 sps:$4 sm:$0xff]  }
 0x18e   :  { %1264 = vmatprep.subr.bf16.mxu0 %v3320_v59  ;;  %1346 = vmatprep.subr.bf16.mxu1 %v3323_v60  ;;  %v3407_v59 = vld [vmem:[#allocation8 + $0x18c] ss:$16 sps:$4 sm:$0xff]   ;;  %v3402_v60 = vld [vmem:[#allocation8 + $0x180] ss:$16 sps:$4 sm:$0xff]  }
 0x191   :  { %1265 = vmatpush1.bf16.msra.mxu0 %v3318_v61  ;;  %1347 = vmatpush1.bf16.msra.mxu1 %v3321_v62  ;;  %v3405_v61 = vld [vmem:[#allocation8 + $0x188] ss:$16 sps:$4 sm:$0xff]   ;;  %v3410_v62 = vld [vmem:[#allocation8 + $0x1a4] ss:$16 sps:$4 sm:$0xff]  }
 0x192   :  { %1266 = vmatprep.subr.bf16.mxu0 %v3326_v0  ;;  %1348 = vmatprep.subr.bf16.mxu1 %v3329_v1  ;;  %v3408_v0 = vld [vmem:[#allocation8 + $0x1a0] ss:$16 sps:$4 sm:$0xff]   ;;  %v3411_v1 = vld [vmem:[#allocation8 + $0x1a8] ss:$16 sps:$4 sm:$0xff]  }
 0x195   :  { %1267 = vmatpush1.bf16.msra.mxu0 %v3324_v2  ;;  %1349 = vmatpush1.bf16.msra.mxu1 %v3327_v3  ;;  %v3416_v2 = vld [vmem:[#allocation8 + $0x1c4] ss:$16 sps:$4 sm:$0xff]   ;;  %v3419_v3 = vld [vmem:[#allocation8 + $0x1cc] ss:$16 sps:$4 sm:$0xff]  }
 0x196   :  { %2157 = vmatprep.subr.bf16.mxu0 %v3332_v39  ;;  %2239 = vmatprep.subr.bf16.mxu1 %v3335_v5  ;;  %v3417_v39 = vld [vmem:[#allocation8 + $0x1c8] ss:$16 sps:$4 sm:$0xff]   ;;  %v3422_v5 = vld [vmem:[#allocation8 + $0x1e4] ss:$16 sps:$4 sm:$0xff]  }
 0x198   :  { %1269 = vmatmul.mubr.bf16.vlgmr.msra.gmra.mrb[4].mxu0 %v403_v8  ;;  %1351 = vmatmul.mubr.bf16.vlgmr.msra.gmra.mrb[4].mxu1 %v403_v8  ;;  %v3423_v8 = vld [vmem:[#allocation8 + $0x1e8] ss:$16 sps:$4 sm:$0xff]  }
 0x199   :  { %2158 = vmatpush1.bf16.msra.mxu0 %v3330_v6  ;;  %2240 = vmatpush1.bf16.msra.mxu1 %v3333_v7  ;;  %v3425_v6 = vld [vmem:[#allocation8 + $0x1ec] ss:$16 sps:$4 sm:$0xff]   ;;  %v3420_v7 = vld [vmem:[#allocation8 + $0x1e0] ss:$16 sps:$4 sm:$0xff]  }
 0x19a   :  { %2159 = vmatprep.subr.bf16.mxu0 %v3338_v63  ;;  %2241 = vmatprep.subr.bf16.mxu1 %v3341_v9  ;;  %v3428_v63 = vld [vmem:[#allocation8 + $0x204] ss:$16 sps:$4 sm:$0xff]   ;;  %v3431_v9 = vld [vmem:[#allocation8 + $0x20c] ss:$16 sps:$4 sm:$0xff]  }
 0x19d   :  { %2160 = vmatpush1.bf16.msra.mxu0 %v3336_v10  ;;  %2242 = vmatpush1.bf16.msra.mxu1 %v3339_v11  ;;  %v3857_v10 = vld [vmem:[%s3896_s4] sm:$0xf] }
 0x19e   :  { %2161 = vmatprep.subr.bf16.mxu0 %v3344_v12  ;;  %2243 = vmatprep.subr.bf16.mxu1 %v3347_v13  ;;  %v538_v11 = vrot.slane %v3857_v10, %v3827_v38  ;;  %v542_v12 = vrot.slane %v3857_v10, %v3835_v40  ;;  %v550_v13 = vrot.slane %v3857_v10, %v3842_v51 }
 0x1a1   :  { %2162 = vmatpush1.bf16.msra.mxu0 %v3342_v14  ;;  %2244 = vmatpush1.bf16.msra.mxu1 %v3345_v15 }
 0x1a2   :  { %2163 = vmatprep.subr.bf16.mxu0 %v3350_v16  ;;  %2245 = vmatprep.subr.bf16.mxu1 %v3353_v17 }
 0x1a5   :  { %2164 = vmatpush1.bf16.msra.mxu0 %v3348_v18  ;;  %2246 = vmatpush1.bf16.msra.mxu1 %v3351_v19 }
 0x1a6   :  { %2165 = vmatprep.subr.bf16.mxu0 %v3356_v20  ;;  %2247 = vmatprep.subr.bf16.mxu1 %v3359_v21 }
 0x1a9   :  { %2166 = vmatpush1.bf16.msra.mxu0 %v3354_v22  ;;  %2248 = vmatpush1.bf16.msra.mxu1 %v3357_v23 }
 0x1aa   :  { %2167 = vmatprep.subr.bf16.mxu0 %v3362_v24  ;;  %2249 = vmatprep.subr.bf16.mxu1 %v3365_v25 }
 0x1ad   :  { %2168 = vmatpush1.bf16.msra.mxu0 %v3360_v26  ;;  %2250 = vmatpush1.bf16.msra.mxu1 %v3363_v27 }
 0x1ae   :  { %2169 = vmatprep.subr.bf16.mxu0 %v3368_v28  ;;  %2251 = vmatprep.subr.bf16.mxu1 %v3371_v29  ;;  %v3426_v29 = vld [vmem:[#allocation8 + $0x200] ss:$16 sps:$4 sm:$0xff]  }
 0x1b1   :  { %2170 = vmatpush1.bf16.msra.mxu0 %v3366_v30  ;;  %2252 = vmatpush1.bf16.msra.mxu1 %v3369_v31  ;;  %v3429_v30 = vld [vmem:[#allocation8 + $0x208] ss:$16 sps:$4 sm:$0xff]  }
 0x1b2   :  { %2171 = vmatprep.subr.bf16.mxu0 %v3374_v32  ;;  %2253 = vmatprep.subr.bf16.mxu1 %v3377_v33  ;;  %v3434_v32 = vld [vmem:[#allocation8 + $0x224] ss:$16 sps:$4 sm:$0xff]   ;;  %v3437_v33 = vld [vmem:[#allocation8 + $0x22c] ss:$16 sps:$4 sm:$0xff]  }
 0x1b5   :  { %2172 = vmatpush1.bf16.msra.mxu0 %v3372_v34  ;;  %2254 = vmatpush1.bf16.msra.mxu1 %v3375_v35  ;;  %v3432_v35 = vld [vmem:[#allocation8 + $0x220] ss:$16 sps:$4 sm:$0xff]  }
 0x1b6   :  { %2173 = vmatprep.subr.bf16.mxu0 %v3380_v36  ;;  %2255 = vmatprep.subr.bf16.mxu1 %v3383_v41  ;;  %v3435_v36 = vld [vmem:[#allocation8 + $0x228] ss:$16 sps:$4 sm:$0xff]   ;;  %v3440_v41 = vld [vmem:[#allocation8 + $0x244] ss:$16 sps:$4 sm:$0xff]  }
 0x1b9   :  { %2174 = vmatpush1.bf16.msra.mxu0 %v3378_v42  ;;  %2256 = vmatpush1.bf16.msra.mxu1 %v3381_v43  ;;  %v3443_v42 = vld [vmem:[#allocation8 + $0x24c] ss:$16 sps:$4 sm:$0xff]   ;;  %v3438_v43 = vld [vmem:[#allocation8 + $0x240] ss:$16 sps:$4 sm:$0xff]  }
 0x1ba   :  { %2175 = vmatprep.subr.bf16.mxu0 %v3386_v44  ;;  %2257 = vmatprep.subr.bf16.mxu1 %v3389_v45  ;;  %v3441_v44 = vld [vmem:[#allocation8 + $0x248] ss:$16 sps:$4 sm:$0xff]   ;;  %v3446_v45 = vld [vmem:[#allocation8 + $0x264] ss:$16 sps:$4 sm:$0xff]  }
 0x1bd   :  { %2176 = vmatpush1.bf16.msra.mxu0 %v3384_v46  ;;  %2258 = vmatpush1.bf16.msra.mxu1 %v3387_v47  ;;  %v3449_v46 = vld [vmem:[#allocation8 + $0x26c] ss:$16 sps:$4 sm:$0xff]   ;;  %v3444_v47 = vld [vmem:[#allocation8 + $0x260] ss:$16 sps:$4 sm:$0xff]  }
 0x1be   :  { %2177 = vmatprep.subr.bf16.mxu0 %v3392_v48  ;;  %2259 = vmatprep.subr.bf16.mxu1 %v3395_v49  ;;  %v3447_v48 = vld [vmem:[#allocation8 + $0x268] ss:$16 sps:$4 sm:$0xff]   ;;  %v3452_v49 = vld [vmem:[#allocation8 + $0x284] ss:$16 sps:$4 sm:$0xff]  }
 0x1c1   :  { %2178 = vmatpush1.bf16.msra.mxu0 %v3390_v50  ;;  %2260 = vmatpush1.bf16.msra.mxu1 %v3393_v52  ;;  %v3455_v50 = vld [vmem:[#allocation8 + $0x28c] ss:$16 sps:$4 sm:$0xff]   ;;  %v3450_v52 = vld [vmem:[#allocation8 + $0x280] ss:$16 sps:$4 sm:$0xff]  }
 0x1c2   :  { %2179 = vmatprep.subr.bf16.mxu0 %v3398_v54  ;;  %2261 = vmatprep.subr.bf16.mxu1 %v3401_v55  ;;  %v3453_v54 = vld [vmem:[#allocation8 + $0x288] ss:$16 sps:$4 sm:$0xff]   ;;  %v3458_v55 = vld [vmem:[#allocation8 + $0x2a4] ss:$16 sps:$4 sm:$0xff]  }
 0x1c5   :  { %2180 = vmatpush1.bf16.msra.mxu0 %v3396_v56  ;;  %2262 = vmatpush1.bf16.msra.mxu1 %v3399_v57  ;;  %v3461_v56 = vld [vmem:[#allocation8 + $0x2ac] ss:$16 sps:$4 sm:$0xff]   ;;  %v3456_v57 = vld [vmem:[#allocation8 + $0x2a0] ss:$16 sps:$4 sm:$0xff]  }
 0x1c6   :  { %2181 = vmatprep.subr.bf16.mxu0 %v3404_v58  ;;  %2263 = vmatprep.subr.bf16.mxu1 %v3407_v59  ;;  %v3459_v58 = vld [vmem:[#allocation8 + $0x2a8] ss:$16 sps:$4 sm:$0xff]   ;;  %v3464_v59 = vld [vmem:[#allocation8 + $0x2c4] ss:$16 sps:$4 sm:$0xff]  }
 0x1c9   :  { %2182 = vmatpush1.bf16.msra.mxu0 %v3402_v60  ;;  %2264 = vmatpush1.bf16.msra.mxu1 %v3405_v61  ;;  %v3467_v60 = vld [vmem:[#allocation8 + $0x2cc] ss:$16 sps:$4 sm:$0xff]   ;;  %v3462_v61 = vld [vmem:[#allocation8 + $0x2c0] ss:$16 sps:$4 sm:$0xff]  }
 0x1ca   :  { %2183 = vmatprep.subr.bf16.mxu0 %v3410_v62  ;;  %2265 = vmatprep.subr.bf16.mxu1 %v3413_v37  ;;  %v3465_v62 = vld [vmem:[#allocation8 + $0x2c8] ss:$16 sps:$4 sm:$0xff]   ;;  %v3470_v37 = vld [vmem:[#allocation8 + $0x2e4] ss:$16 sps:$4 sm:$0xff]  }
 0x1cd   :  { %2184 = vmatpush1.bf16.msra.mxu0 %v3408_v0  ;;  %2266 = vmatpush1.bf16.msra.mxu1 %v3411_v1  ;;  %v3473_v0 = vld [vmem:[#allocation8 + $0x2ec] ss:$16 sps:$4 sm:$0xff]   ;;  %v3468_v1 = vld [vmem:[#allocation8 + $0x2e0] ss:$16 sps:$4 sm:$0xff]  }
 0x1ce   :  { %2185 = vmatprep.subr.bf16.mxu0 %v3416_v2  ;;  %2267 = vmatprep.subr.bf16.mxu1 %v3419_v3  ;;  %v3471_v2 = vld [vmem:[#allocation8 + $0x2e8] ss:$16 sps:$4 sm:$0xff]   ;;  %v3476_v3 = vld [vmem:[#allocation8 + $0x304] ss:$16 sps:$4 sm:$0xff]  }
 0x1d1   :  { %2186 = vmatpush1.bf16.msra.mxu0 %v3414_v4  ;;  %2268 = vmatpush1.bf16.msra.mxu1 %v3417_v39  ;;  %v3479_v4 = vld [vmem:[#allocation8 + $0x30c] ss:$16 sps:$4 sm:$0xff]   ;;  %v3474_v39 = vld [vmem:[#allocation8 + $0x300] ss:$16 sps:$4 sm:$0xff]  }
 0x1d2   :  { %2187 = vmatprep.subr.bf16.mxu0 %v3422_v5  ;;  %2269 = vmatprep.subr.bf16.mxu1 %v3425_v6  ;;  %v3477_v5 = vld [vmem:[#allocation8 + $0x308] ss:$16 sps:$4 sm:$0xff]   ;;  %v3482_v6 = vld [vmem:[#allocation8 + $0x324] ss:$16 sps:$4 sm:$0xff]  }
 0x1d5   :  { %2188 = vmatpush1.bf16.msra.mxu0 %v3420_v7  ;;  %2270 = vmatpush1.bf16.msra.mxu1 %v3423_v8  ;;  %v3485_v7 = vld [vmem:[#allocation8 + $0x32c] ss:$16 sps:$4 sm:$0xff]   ;;  %v3480_v8 = vld [vmem:[#allocation8 + $0x320] ss:$16 sps:$4 sm:$0xff]  }
 0x1d6   :  { %2198 = vmatprep.subr.bf16.mxu0 %v3428_v63  ;;  %2280 = vmatprep.subr.bf16.mxu1 %v3431_v9  ;;  %v3483_v63 = vld [vmem:[#allocation8 + $0x328] ss:$16 sps:$4 sm:$0xff]   ;;  %v3488_v9 = vld [vmem:[#allocation8 + $0x344] ss:$16 sps:$4 sm:$0xff]  }
 0x26b   :  { %v1270_v14 = vpop.f32.mrb[4].mxu0  ;;  %v3865_v15 = vpop.f32.mrb[4].mxu1 }
 0x26c   :  { %v3055_v16 = vadd.f32 %v1270_v14, %v538_v11  ;;  %v1272_v17 = vpop.f32.mrb[5].mxu0  ;;  %v1354_v18 = vpop.f32.mrb[5].mxu1  ;;  %v3491_v11 = vld [vmem:[#allocation8 + $0x34c] ss:$16 sps:$4 sm:$0xff]   ;;  %v3494_v14 = vld [vmem:[#allocation8 + $0x364] ss:$16 sps:$4 sm:$0xff]  }
 0x26d   :  { %v3056_v19 = vadd.f32 %v1272_v17, %v542_v12  ;;  %v3058_v20 = vadd.f32 %v1354_v18, %v550_v13  ;;  %v1274_v21 = vpop.f32.mrb[6].mxu0  ;;  %v1356_v22 = vpop.f32.mrb[6].mxu1  ;;  %v3486_v12 = vld [vmem:[#allocation8 + $0x340] ss:$16 sps:$4 sm:$0xff]   ;;  %v3489_v13 = vld [vmem:[#allocation8 + $0x348] ss:$16 sps:$4 sm:$0xff]  }
 0x26e   :  { %v1359_v23 = vmax.f32 %v3055_v16, 0.0  ;;  %v1275_v24 = vpop.f32.mrb[7].mxu0  ;;  %v1357_v25 = vpop.f32.mrb[7].mxu1  ;;  %v3497_v16 = vld [vmem:[#allocation8 + $0x36c] ss:$16 sps:$4 sm:$0xff]  }
 0x26f   :  { %v1360_v26 = vmax.f32 %v3056_v19, 0.0  ;;  %v1362_v27 = vmax.f32 %v3058_v20, 0.0  ;;  %v3492_v17 = vld [vmem:[#allocation8 + $0x360] ss:$16 sps:$4 sm:$0xff]   ;;  %v3495_v18 = vld [vmem:[#allocation8 + $0x368] ss:$16 sps:$4 sm:$0xff]  }
 0x270   :  { %v1363_v31 = vpack.c.bf16 %v1359_v23, %v1359_v23  ;;  %v3500_v19 = vld [vmem:[#allocation8 + $0x384] ss:$16 sps:$4 sm:$0xff]   ;;  %v3503_v20 = vld [vmem:[#allocation8 + $0x38c] ss:$16 sps:$4 sm:$0xff]   ;;  %v3498_v21 = vld [vmem:[#allocation8 + $0x380] ss:$16 sps:$4 sm:$0xff]  }
 0x271   :  { %v1364_v28 = vpack.c.bf16 %v1360_v26, %v1360_v26  ;;  %v1366_v34 = vpack.c.bf16 %v1362_v27, %v1362_v27  ;;  %v3501_v22 = vld [vmem:[#allocation8 + $0x388] ss:$16 sps:$4 sm:$0xff]   ;;  %v3506_v23 = vld [vmem:[#allocation8 + $0x3a4] ss:$16 sps:$4 sm:$0xff]   ;;  %v3509_v24 = vld [vmem:[#allocation8 + $0x3ac] ss:$16 sps:$4 sm:$0xff]   ;;  %v546_v27 = vrot.slane %v3857_v10, %v3849_v53 }
 0x272   :  { %v3504_v25 = vld [vmem:[#allocation8 + $0x3a0] ss:$16 sps:$4 sm:$0xff]   ;;  %v3507_v26 = vld [vmem:[#allocation8 + $0x3a8] ss:$16 sps:$4 sm:$0xff]  }
 0x273   :  { %2189 = vmatprep.mubr.bf16.mxu0 %v1364_v28  ;;  %2271 = vmatprep.mubr.bf16.mxu1 %v1364_v28  ;;  %v3512_v28 = vld [vmem:[#allocation8 + $0x3c4] ss:$16 sps:$4 sm:$0xff]  }
 0x274   :  { %2190 = vmatmul.mubr.bf16.vlgmr.msra.gmra.mrb[8].mxu0 %v1363_v31  ;;  %2272 = vmatmul.mubr.bf16.vlgmr.msra.gmra.mrb[8].mxu1 %v1363_v31  ;;  %v3513_v31 = vld [vmem:[#allocation8 + $0x3c8] ss:$16 sps:$4 sm:$0xff]   ;;  %v3522_v10 = vld [vmem:[#allocation10 + $0x40] sm:$0xff]  }
 0x275   :  { %2199 = vmatpush1.bf16.msra.mxu0 %v3426_v29  ;;  %2281 = vmatpush1.bf16.msra.mxu1 %v3429_v30  ;;  %v3515_v29 = vld [vmem:[#allocation8 + $0x3cc] ss:$16 sps:$4 sm:$0xff]   ;;  %v3510_v30 = vld [vmem:[#allocation8 + $0x3c0] ss:$16 sps:$4 sm:$0xff]  }
 0x276   :  { %2230 = vmatprep.mubr.bf16.mxu0 %v1366_v34  ;;  %2312 = vmatprep.mubr.bf16.mxu1 %v1366_v34  ;;  %v3521_v34 = vld [vmem:[#allocation8 + $0x3ec] ss:$16 sps:$4 sm:$0xff]  }
 0x277   :  { %2200 = vmatprep.subr.bf16.mxu0 %v3434_v32  ;;  %2282 = vmatprep.subr.bf16.mxu1 %v3437_v33  ;;  %v3057_v32 = vadd.f32 %v3865_v15, %v546_v27  ;;  %v3518_v33 = vld [vmem:[#allocation8 + $0x3e4] ss:$16 sps:$4 sm:$0xff]   ;;  %v3526_v15 = vld [vmem:[#allocation10 + $0x48] sm:$0xff]  }
 0x279   :  { %2201 = vmatpush1.bf16.msra.mxu0 %v3432_v35  ;;  %2283 = vmatpush1.bf16.msra.mxu1 %v3435_v36  ;;  %v3516_v35 = vld [vmem:[#allocation8 + $0x3e0] ss:$16 sps:$4 sm:$0xff]   ;;  %v3519_v36 = vld [vmem:[#allocation8 + $0x3e8] ss:$16 sps:$4 sm:$0xff]  }
 0x27a   :  { %2202 = vmatprep.subr.bf16.mxu0 %v3440_v41  ;;  %2284 = vmatprep.subr.bf16.mxu1 %v3443_v42  ;;  %v1361_v41 = vmax.f32 %v3057_v32, 0.0  ;;  %v3523_v42 = vld [vmem:[#allocation10 + $0xc0] sm:$0xff]  }
 0x27d   :  { %2203 = vmatpush1.bf16.msra.mxu0 %v3438_v43  ;;  %2285 = vmatpush1.bf16.msra.mxu1 %v3441_v44  ;;  %v3524_v43 = vld [vmem:[#allocation10] sm:$0xff]  }
 0x27e   :  { %2204 = vmatprep.subr.bf16.mxu0 %v3446_v45  ;;  %2286 = vmatprep.subr.bf16.mxu1 %v3449_v46  ;;  %v3525_v44 = vld [vmem:[#allocation10 + $0x80] sm:$0xff]   ;;  %v1365_v45 = vpack.c.bf16 %v1361_v41, %v1361_v41  ;;  %v3527_v46 = vld [vmem:[#allocation10 + $0xc8] sm:$0xff]  }
 0x281   :  { %2205 = vmatpush1.bf16.msra.mxu0 %v3444_v47  ;;  %2287 = vmatpush1.bf16.msra.mxu1 %v3447_v48  ;;  %v3528_v47 = vld [vmem:[#allocation10 + $0x8] sm:$0xff]  }
 0x282   :  { %2206 = vmatprep.subr.bf16.mxu0 %v3452_v49  ;;  %2288 = vmatprep.subr.bf16.mxu1 %v3455_v50  ;;  %v3529_v48 = vld [vmem:[#allocation10 + $0x88] sm:$0xff]   ;;  %v3530_v49 = vld [vmem:[#allocation10 + $0x50] sm:$0xff]  }
 0x283   :  { %v3531_v50 = vld [vmem:[#allocation10 + $0xd0] sm:$0xff]  }
 0x285   :  { %2207 = vmatpush1.bf16.msra.mxu0 %v3450_v52  ;;  %2289 = vmatpush1.bf16.msra.mxu1 %v3453_v54  ;;  %v3532_v52 = vld [vmem:[#allocation10 + $0x10] sm:$0xff]  }
 0x286   :  { %2208 = vmatprep.subr.bf16.mxu0 %v3458_v55  ;;  %2290 = vmatprep.subr.bf16.mxu1 %v3461_v56  ;;  %v3533_v54 = vld [vmem:[#allocation10 + $0x90] sm:$0xff]   ;;  %v3534_v55 = vld [vmem:[#allocation10 + $0x58] sm:$0xff]  }
 0x287   :  { %v3535_v56 = vld [vmem:[#allocation10 + $0xd8] sm:$0xff]  }
 0x289   :  { %2209 = vmatpush1.bf16.msra.mxu0 %v3456_v57  ;;  %2291 = vmatpush1.bf16.msra.mxu1 %v3459_v58  ;;  %v3536_v57 = vld [vmem:[#allocation10 + $0x18] sm:$0xff]  }
 0x28a   :  { %2210 = vmatprep.subr.bf16.mxu0 %v3464_v59  ;;  %2292 = vmatprep.subr.bf16.mxu1 %v3467_v60  ;;  %v3537_v58 = vld [vmem:[#allocation10 + $0x98] sm:$0xff]   ;;  %v3538_v59 = vld [vmem:[#allocation10 + $0x60] sm:$0xff]  }
 0x28b   :  { %v3539_v60 = vld [vmem:[#allocation10 + $0xe0] sm:$0xff]  }
 0x28d   :  { %2211 = vmatpush1.bf16.msra.mxu0 %v3462_v61  ;;  %2293 = vmatpush1.bf16.msra.mxu1 %v3465_v62  ;;  %v3540_v61 = vld [vmem:[#allocation10 + $0x20] sm:$0xff]  }
 0x28e   :  { %2212 = vmatprep.subr.bf16.mxu0 %v3470_v37  ;;  %2294 = vmatprep.subr.bf16.mxu1 %v3473_v0  ;;  %v3541_v62 = vld [vmem:[#allocation10 + $0xa0] sm:$0xff]   ;;  %v3542_v37 = vld [vmem:[#allocation10 + $0x68] sm:$0xff]  }
 0x28f   :  { %v3543_v0 = vld [vmem:[#allocation10 + $0xe8] sm:$0xff]  }
 0x291   :  { %2213 = vmatpush1.bf16.msra.mxu0 %v3468_v1  ;;  %2295 = vmatpush1.bf16.msra.mxu1 %v3471_v2  ;;  %v3544_v1 = vld [vmem:[#allocation10 + $0x28] sm:$0xff]  }
 0x292   :  { %2214 = vmatprep.subr.bf16.mxu0 %v3476_v3  ;;  %2296 = vmatprep.subr.bf16.mxu1 %v3479_v4  ;;  %v3545_v2 = vld [vmem:[#allocation10 + $0xa8] sm:$0xff]   ;;  %v3546_v3 = vld [vmem:[#allocation10 + $0x70] sm:$0xff]  }
 0x293   :  { %v3547_v4 = vld [vmem:[#allocation10 + $0xf0] sm:$0xff]  }
 0x295   :  { %2215 = vmatpush1.bf16.msra.mxu0 %v3474_v39  ;;  %2297 = vmatpush1.bf16.msra.mxu1 %v3477_v5  ;;  %v3548_v39 = vld [vmem:[#allocation10 + $0x30] sm:$0xff]  }
 0x296   :  { %2216 = vmatprep.subr.bf16.mxu0 %v3482_v6  ;;  %2298 = vmatprep.subr.bf16.mxu1 %v3485_v7  ;;  %v3549_v5 = vld [vmem:[#allocation10 + $0xb0] sm:$0xff]   ;;  %v3550_v6 = vld [vmem:[#allocation10 + $0x78] sm:$0xff]  }
 0x297   :  { %v3551_v7 = vld [vmem:[#allocation10 + $0xf8] sm:$0xff]  }
 0x299   :  { %2217 = vmatpush1.bf16.msra.mxu0 %v3480_v8  ;;  %2299 = vmatpush1.bf16.msra.mxu1 %v3483_v63  ;;  %v3552_v8 = vld [vmem:[#allocation10 + $0x38] sm:$0xff]  }
 0x29a   :  { %2218 = vmatprep.subr.bf16.mxu0 %v3488_v9  ;;  %2300 = vmatprep.subr.bf16.mxu1 %v3491_v11  ;;  %v3553_v63 = vld [vmem:[#allocation10 + $0xb8] sm:$0xff]  }
 0x29b   :  { %v1495_v9 = vld [vmem:[%s3898_s6] sm:$0xf] }
 0x29c   :  { %v1500_v11 = vrot.slane %v1495_v9, %v3827_v38 }
 0x29d   :  { %2219 = vmatpush1.bf16.msra.mxu0 %v3486_v12  ;;  %2301 = vmatpush1.bf16.msra.mxu1 %v3489_v13  ;;  %v1508_v12 = vrot.slane %v1495_v9, %v3849_v53  ;;  %v1504_v13 = vrot.slane %v1495_v9, %v3835_v40 }
 0x29e   :  { %2220 = vmatprep.subr.bf16.mxu0 %v3494_v14  ;;  %2302 = vmatprep.subr.bf16.mxu1 %v3497_v16  ;;  %v1512_v14 = vrot.slane %v1495_v9, %v3842_v51 }
 0x2a1   :  { %2221 = vmatpush1.bf16.msra.mxu0 %v3492_v17  ;;  %2303 = vmatpush1.bf16.msra.mxu1 %v3495_v18 }
 0x2a2   :  { %2222 = vmatprep.subr.bf16.mxu0 %v3500_v19  ;;  %2304 = vmatprep.subr.bf16.mxu1 %v3503_v20 }
 0x2a5   :  { %2223 = vmatpush1.bf16.msra.mxu0 %v3498_v21  ;;  %2305 = vmatpush1.bf16.msra.mxu1 %v3501_v22 }
 0x2a6   :  { %2224 = vmatprep.subr.bf16.mxu0 %v3506_v23  ;;  %2306 = vmatprep.subr.bf16.mxu1 %v3509_v24 }
 0x2a9   :  { %2225 = vmatpush1.bf16.msra.mxu0 %v3504_v25  ;;  %2307 = vmatpush1.bf16.msra.mxu1 %v3507_v26 }
 0x2aa   :  { %2226 = vmatprep.subr.bf16.mxu0 %v3512_v28  ;;  %2308 = vmatprep.subr.bf16.mxu1 %v3515_v29 }
 0x2ad   :  { %2227 = vmatpush1.bf16.msra.mxu0 %v3510_v30  ;;  %2309 = vmatpush1.bf16.msra.mxu1 %v3513_v31 }
 0x2ae   :  { %2228 = vmatprep.subr.bf16.mxu0 %v3518_v33  ;;  %2310 = vmatprep.subr.bf16.mxu1 %v3521_v34  ;;  %v2978_v34 = vld [vmem:[%s3900_s8] ss:$0 sm:$0xff] }
 0x2b1   :  { %2229 = vmatpush1.bf16.msra.mxu0 %v3516_v35  ;;  %2311 = vmatpush1.bf16.msra.mxu1 %v3519_v36 }
 0x2b2   :  { %3011 = vmatprep.subr.bf16.mxu0 %v3522_v10  ;;  %3033 = vmatprep.subr.bf16.mxu1 %v3523_v42 }
 0x2b4   :  { %2231 = vmatmul.mubr.bf16.vlgmr.msra.gmra.mrb[8].mxu0 %v1365_v45  ;;  %2313 = vmatmul.mubr.bf16.vlgmr.msra.gmra.mrb[8].mxu1 %v1365_v45 }
 0x2b5   :  { %3012 = vmatpush3.bf16.msra.mxu0 %v3524_v43  ;;  %3034 = vmatpush3.bf16.msra.mxu1 %v3525_v44 }
 0x2b6   :  { %3013 = vmatprep.subr.bf16.mxu0 %v3526_v15  ;;  %3035 = vmatprep.subr.bf16.mxu1 %v3527_v46 }
 0x2b9   :  { %3014 = vmatpush3.bf16.msra.mxu0 %v3528_v47  ;;  %3036 = vmatpush3.bf16.msra.mxu1 %v3529_v48 }
 0x2ba   :  { %3015 = vmatprep.subr.bf16.mxu0 %v3530_v49  ;;  %3037 = vmatprep.subr.bf16.mxu1 %v3531_v50 }
 0x2bd   :  { %3016 = vmatpush3.bf16.msra.mxu0 %v3532_v52  ;;  %3038 = vmatpush3.bf16.msra.mxu1 %v3533_v54 }
 0x2be   :  { %3017 = vmatprep.subr.bf16.mxu0 %v3534_v55  ;;  %3039 = vmatprep.subr.bf16.mxu1 %v3535_v56 }
 0x2c1   :  { %3018 = vmatpush3.bf16.msra.mxu0 %v3536_v57  ;;  %3040 = vmatpush3.bf16.msra.mxu1 %v3537_v58 }
 0x2c2   :  { %3019 = vmatprep.subr.bf16.mxu0 %v3538_v59  ;;  %3041 = vmatprep.subr.bf16.mxu1 %v3539_v60 }
 0x2c5   :  { %3020 = vmatpush3.bf16.msra.mxu0 %v3540_v61  ;;  %3042 = vmatpush3.bf16.msra.mxu1 %v3541_v62 }
 0x2c6   :  { %3021 = vmatprep.subr.bf16.mxu0 %v3542_v37  ;;  %3043 = vmatprep.subr.bf16.mxu1 %v3543_v0 }
 0x2c9   :  { %3022 = vmatpush3.bf16.msra.mxu0 %v3544_v1  ;;  %3044 = vmatpush3.bf16.msra.mxu1 %v3545_v2 }
 0x2ca   :  { %3023 = vmatprep.subr.bf16.mxu0 %v3546_v3  ;;  %3045 = vmatprep.subr.bf16.mxu1 %v3547_v4 }
 0x2cd   :  { %3024 = vmatpush3.bf16.msra.mxu0 %v3548_v39  ;;  %3046 = vmatpush3.bf16.msra.mxu1 %v3549_v5 }
 0x2ce   :  { %3025 = vmatprep.subr.bf16.mxu0 %v3550_v6  ;;  %3047 = vmatprep.subr.bf16.mxu1 %v3551_v7 }
 0x2d1   :  { %3026 = vmatpush3.bf16.msra.mxu0 %v3552_v8  ;;  %3048 = vmatpush3.bf16.msra.mxu1 %v3553_v63 }
 0x387   :  { %v2232_v16 = vpop.f32.mrb[8].mxu0  ;;  %v2314_v17 = vpop.f32.mrb[8].mxu1 }
 0x388   :  { %v3059_v18 = vadd.f32 %v2232_v16, %v1500_v11  ;;  %v3061_v19 = vadd.f32 %v2314_v17, %v1508_v12  ;;  %v2234_v20 = vpop.f32.mrb[9].mxu0  ;;  %v2316_v21 = vpop.f32.mrb[9].mxu1 }
 0x389   :  { %v3060_v22 = vadd.f32 %v2234_v20, %v1504_v13  ;;  %v3062_v23 = vadd.f32 %v2316_v21, %v1512_v14  ;;  %v2236_v24 = vpop.f32.mrb[10].mxu0  ;;  %v2318_v25 = vpop.f32.mrb[10].mxu1 }
 0x38a   :  { %v2321_v26 = vmax.f32 %v3059_v18, 0.0  ;;  %v2323_v27 = vmax.f32 %v3061_v19, 0.0  ;;  %v2237_v28 = vpop.f32.mrb[11].mxu0  ;;  %v2319_v38 = vpop.f32.mrb[11].mxu1 }
 0x38b   :  { %v2322_v29 = vmax.f32 %v3060_v22, 0.0  ;;  %v2324_v53 = vmax.f32 %v3062_v23, 0.0 }
 0x38c   :  { %v2325_v31 = vpack.c.bf16 %v2321_v26, %v2321_v26  ;;  %v2327_v51 = vpack.c.bf16 %v2323_v27, %v2323_v27 }
 0x38d   :  { %v2326_v30 = vpack.c.bf16 %v2322_v29, %v2322_v29  ;;  %v2328_v40 = vpack.c.bf16 %v2324_v53, %v2324_v53 }
 0x38f   :  { %2624 = vmatprep.mubr.bf16.mxu0 %v2326_v30  ;;  %2664 = vmatprep.mubr.bf16.mxu1 %v2328_v40 }
 0x390   :  { %2625 = vmatmul.mubr.bf16.vlgmr.msra.gmra.mrb[12].mxu0 %v2325_v31  ;;  %2665 = vmatmul.mubr.bf16.vlgmr.msra.gmra.mrb[12].mxu1 %v2327_v51 }
 0x463   :  { %v3027_v32 = vpop.f32.mrb[12].mxu0  ;;  %v3049_v33 = vpop.f32.mrb[12].mxu1 }
 0x464   :  { %v3028_v35 = vpop.f32.mrb[13].mxu0  ;;  %v3050_v36 = vpop.f32.mrb[13].mxu1 }
 0x465   :  { %v3029_v41 = vadd.f32 %v3028_v35, %v3027_v32  ;;  %v3051_v10 = vadd.f32 %v3050_v36, %v3049_v33  ;;  %v3030_v42 = vpop.f32.mrb[14].mxu0  ;;  %v3052_v43 = vpop.f32.mrb[14].mxu1 }
 0x466   :  { %v3031_v44 = vpop.f32.mrb[15].mxu0  ;;  %v3053_v45 = vpop.f32.mrb[15].mxu1 }
 0x467   :  { %v2627_v15 = vadd.f32 %v3029_v41, %v2978_v34 }
 0x469   :  { %v2667_v46 = vadd.f32 %v3051_v10, %v2627_v15 }
 0x46b   :  { %2672 = vst [vmem:[#allocation11] sm:$0xff] %v2667_v46 }
 0x46c   :  { %3675 = shalt.err (!%p3672_p2)
}
 0x46d   :  { %s3676_s14 = scalar_lea.hbm %s3901_s9, 128 }
 0x46e   :  { %p3677_p3 = scmp.ne.s32.totalorder %s3901_s9, %s3676_s14  ;;  %p3680_p4 = scmp.lt.u32.totalorder %s3676_s14, %s3901_s9 }
 0x470   :  { %p3682_p5 = pnand %p3680_p4, %p3677_p3 }
 0x472   :  { %3685 = shalt.err (!%p3682_p5)
}
 0x473   :  { %2682 = dma.vmem_to_hbm [thread:$0]  %s2680_s13, 128, %s3901_s9, [#allocation4]  }
 0x474   :  { %3692 = dma.done.wait [#allocation4], 128  }
 0x475   :  { %3693 = vsyncadd [#allocation4], 4294967168 }
 0x476   :  { %2686 = vsyncpa [#allocation3], 1 }
 0x477   :  { %2687 = vsyncpa [#allocation6], 1 }
 0x478   :  { %2688 = vsyncpa [#allocation9], 1 }
 0x479   :  { %2689 = vsyncpa [#allocation4], 1 }

</bundles_post_ra>
